<compile_context>
chip_gen: v5e
topology: v5e:2x2
jax: 0.10.0
libtpu: 0.0.40
codegen_flags: <defaults>
</compile_context>

<pallas_src>
import functools
import math

import jax
import jax.numpy as jnp
from jax.experimental import pallas as pl
from jax.experimental.pallas import tpu as pltpu


def _round_up(x, m):
    return ((x + m - 1) // m) * m


def _mlp_kernel(num_layers, *refs):
    """refs = (x_ref, w0, b0, w1, b1, ..., w_{L-1}, b_{L-1}, out_ref).

    Hidden layers apply ReLU; the final layer is a bare Linear (matches the
    PyTorch nn.Sequential).
    """
    x_ref, out_ref = refs[0], refs[-1]
    params = refs[1:-1]

    x = x_ref[...]
    for layer in range(num_layers):
        w_ref = params[2 * layer]
        b_ref = params[2 * layer + 1]
        # MXU matmul in the weights' dtype (bf16 by default), f32 accumulation.
        h = jnp.dot(x.astype(w_ref.dtype), w_ref[...],
                    preferred_element_type=jnp.float32)
        h = h + b_ref[...]           # bias is (1, out) f32 -> broadcast rows
        if layer < num_layers - 1:
            h = jnp.maximum(h, 0.0)  # ReLU on hidden layers only
        x = h
    out_ref[...] = x.astype(out_ref.dtype)


def pack_decoder_params(weights, biases, *, param_dtype=jnp.bfloat16,
                        wide_weight_budget_bytes=16 * 1024 * 1024):
    """One-time packing of decoder params into lane-dense kernel operands.

    weights[i]: (in_i, out_i)  (transposed vs torch.nn.Linear.weight, y = x@W+b)
    biases[i]:  (out_i,)
    """
    num_layers = len(weights)
    latent = int(weights[0].shape[0])
    num_labels = int(weights[-1].shape[1])

    # Row-grouping factor so the packed label width is a multiple of 128.
    g = 128 // math.gcd(num_labels, 128)
    itemsize = jnp.dtype(param_dtype).itemsize
    # x2: assume the constant-index weight blocks may still be double-buffered.
    wide_bytes = 2 * sum(g * int(w.shape[0]) * g * int(w.shape[1]) * itemsize
                         for w in weights)
    if wide_bytes > wide_weight_budget_bytes:
        g = 1  # fallback: un-widened hidden layers, lane-pad only the last layer

    if g > 1:
        label_cols = g * num_labels          # multiple of 128 by construction
    else:
        label_cols = _round_up(num_labels, 128)
    pad_cols = label_cols - g * num_labels

    ws, bs = [], []
    for i, (w, b) in enumerate(zip(weights, biases)):
        w = jnp.asarray(w, param_dtype)
        b = jnp.asarray(b, jnp.float32).reshape(1, -1)
        if g > 1:
            w = jnp.kron(jnp.eye(g, dtype=param_dtype), w)
            b = jnp.tile(b, (1, g))
        if i == num_layers - 1 and pad_cols:
            w = jnp.pad(w, ((0, 0), (0, pad_cols)))
            b = jnp.pad(b, ((0, 0), (0, pad_cols)))
        ws.append(w)
        bs.append(b)

    return dict(weights=ws, biases=bs, g=g, latent=latent,
                num_labels=num_labels, label_cols=label_cols,
                num_layers=num_layers)


def _decoder_apply(z, packed, *, tm_wide=512, out_dtype=None):
    g = packed["g"]
    latent = packed["latent"]
    num_labels = packed["num_labels"]
    label_cols = packed["label_cols"]
    num_layers = packed["num_layers"]
    out_dtype = z.dtype if out_dtype is None else out_dtype

    lead = z.shape[:-1]
    n_rows = math.prod(lead) if lead else 1
    z2d = z.reshape(n_rows, latent)

    # --- balanced row tiling (wide rows) ---------------------------------
    n_wide = pl.cdiv(n_rows, g)
    steps = pl.cdiv(n_wide, tm_wide)
    if steps == 1 and n_wide >= 16:
        steps = 2  # let the row axis shard across v7x's two TensorCores
    tm = _round_up(pl.cdiv(n_wide, steps), 8)
    steps = pl.cdiv(n_wide, tm)
    n_wide_pad = steps * tm
    n_rows_pad = n_wide_pad * g

    if n_rows_pad != n_rows:
        z2d = jnp.pad(z2d, ((0, n_rows_pad - n_rows), (0, 0)))
    # Free row-major regroup: G consecutive rows -> one lane-dense wide row.
    z_wide = z2d.reshape(n_wide_pad, g * latent)

    # --- operands & specs (weights VMEM-resident, z/out pipelined) -------
    operands = [z_wide]
    in_specs = [pl.BlockSpec((tm, g * latent), lambda i: (i, 0))]
    for w, b in zip(packed["weights"], packed["biases"]):
        operands += [w, b]
        in_specs += [pl.BlockSpec(w.shape, lambda i: (0, 0)),
                     pl.BlockSpec(b.shape, lambda i: (0, 0))]

    # --- explicit VMEM budget (double-buffered params + tiles + f32 temps)
    resident = 0
    for w, b in zip(packed["weights"], packed["biases"]):
        resident += 2 * w.size * w.dtype.itemsize
        resident += 2 * b.size * b.dtype.itemsize
    resident += 2 * tm * g * latent * z_wide.dtype.itemsize
    resident += 2 * tm * label_cols * jnp.dtype(out_dtype).itemsize
    max_cols = max(int(w.shape[1]) for w in packed["weights"])
    resident += 2 * tm * max_cols * 4  # f32 activations between layers
    vmem_limit = int(min(64 << 20, max(32 << 20, resident + (8 << 20))))

    out_wide = pl.pallas_call(
        functools.partial(_mlp_kernel, num_layers),
        out_shape=jax.ShapeDtypeStruct((n_wide_pad, label_cols), out_dtype),
        grid_spec=pltpu.PrefetchScalarGridSpec(
            num_scalar_prefetch=0,
            grid=(steps,),
            in_specs=in_specs,
            out_specs=pl.BlockSpec((tm, label_cols), lambda i: (i, 0)),
        ),
        compiler_params=pltpu.CompilerParams(
            dimension_semantics=("parallel",),
            vmem_limit_bytes=vmem_limit),
    )(*operands)

    if g > 1:
        out = out_wide.reshape(n_rows_pad, num_labels)[:n_rows]
    else:
        out = out_wide[:n_rows, :num_labels]
    return out.reshape(*lead, num_labels)


def make_gpvae_decoder(weights, biases, *, param_dtype=jnp.bfloat16,
                       tm_wide=512, out_dtype=None,
                       wide_weight_budget_bytes=16 * 1024 * 1024):
    """Pack params once, return a jitted forward(z) closing over them."""
    packed = pack_decoder_params(
        weights, biases, param_dtype=param_dtype,
        wide_weight_budget_bytes=wide_weight_budget_bytes)

    @jax.jit
    def forward(z):
        return _decoder_apply(z, packed, tm_wide=tm_wide, out_dtype=out_dtype)

    return forward


def gpvae_decoder_forward(z, weights, biases, *, param_dtype=jnp.bfloat16,
                          tm_wide=512, out_dtype=None,
                          wide_weight_budget_bytes=16 * 1024 * 1024):
    """Convenience one-shot entry (packs params on every call)."""
    packed = pack_decoder_params(
        weights, biases, param_dtype=param_dtype,
        wide_weight_budget_bytes=wide_weight_budget_bytes)
    return _decoder_apply(z, packed, tm_wide=tm_wide, out_dtype=out_dtype)


def init_decoder_params(key, latent_size, hidden_size, num_hidden_layers,
                        num_labels):
    """Deterministic synthetic parameters matching GPVAEDecoder.__init__ shapes."""
    dims = [latent_size] + [hidden_size] * num_hidden_layers + [num_labels]
    weights, biases = [], []
    for i in range(len(dims) - 1):
        key, wk, bk = jax.random.split(key, 3)
        fan_in, fan_out = dims[i], dims[i + 1]
        bound = 1.0 / math.sqrt(fan_in)
        # stored as (in, out): y = x @ W + b
        weights.append(jax.random.uniform(wk, (fan_in, fan_out), jnp.float32,
                                          -bound, bound))
        biases.append(jax.random.uniform(bk, (fan_out,), jnp.float32,
                                         -bound, bound))
    return weights, biases


def reference_forward(z, weights, biases):
    """Plain-JAX reference of the PyTorch forward."""
    x = z.astype(jnp.float32)
    for i, (w, b) in enumerate(zip(weights, biases)):
        x = x @ w + b
        if i < len(weights) - 1:
            x = jnp.maximum(x, 0.0)
    return x


if __name__ == "__main__":
    # Config consistent with the module:
    #   latent_size=16, decoder_hidden_size=32, num_hidden_layers=2, num_labels=8
    latent_size = 16
    hidden_size = 32
    num_hidden_layers = 2
    num_labels = 8
    batch, seq = 2, 8  # GP-VAE latent sequence: z has shape (batch, seq, latent)

    key = jax.random.PRNGKey(0)
    key, zk = jax.random.split(key)
    z = jax.random.normal(zk, (batch, seq, latent_size), jnp.float32)

    weights, biases = init_decoder_params(
        key, latent_size, hidden_size, num_hidden_layers, num_labels
    )
    ref = reference_forward(z, weights, biases)

    # 1) Exactness check with f32 weights (validates packing / kernel math).
    out_f32 = jax.block_until_ready(
        gpvae_decoder_forward(z, weights, biases, param_dtype=jnp.float32))
    assert out_f32.shape == (batch, seq, num_labels), out_f32.shape
    assert jnp.allclose(out_f32, ref, atol=2e-5, rtol=2e-5), "f32 mismatch"

    # 2) Default perf path: bf16 weights/activations, f32 accumulation.
    decoder = make_gpvae_decoder(weights, biases)   # packs once, jitted
    out_bf16 = jax.block_until_ready(decoder(z))
    assert out_bf16.shape == (batch, seq, num_labels), out_bf16.shape
    assert jnp.allclose(out_bf16, ref, atol=3e-2, rtol=3e-2), "bf16 mismatch"

    # 3) Multi-step grid, balanced tail tiling and row padding/slicing.
    key, zk2 = jax.random.split(key)
    z2 = jax.random.normal(zk2, (5, 500, latent_size), jnp.float32)
    out2 = jax.block_until_ready(decoder(z2))
    ref2 = reference_forward(z2, weights, biases)
    assert out2.shape == (5, 500, num_labels), out2.shape
    assert jnp.allclose(out2, ref2, atol=3e-2, rtol=3e-2), "mismatch (tiled case)"

    # 4) Fallback path (un-widened hidden layers, lane-padded final layer):
    #    forced via a zero widening budget; checked exactly with f32 weights.
    out_fb = jax.block_until_ready(
        gpvae_decoder_forward(z, weights, biases, param_dtype=jnp.float32,
                              wide_weight_budget_bytes=0))
    assert out_fb.shape == (batch, seq, num_labels), out_fb.shape
    assert jnp.allclose(out_fb, ref, atol=2e-5, rtol=2e-5), "fallback mismatch"

    print("KERNEL_OK")
</pallas_src>

<mosaic_0001>
module attributes {stable_mosaic.version = 11 : i64} {
  func.func @_mlp_kernel(%arg0: i32, %arg1: memref<8x256xf32, #tpu.memory_space<vmem>>, %arg2: memref<256x512xf32, #tpu.memory_space<vmem>>, %arg3: memref<1x512xf32, #tpu.memory_space<vmem>>, %arg4: memref<512x512xf32, #tpu.memory_space<vmem>>, %arg5: memref<1x512xf32, #tpu.memory_space<vmem>>, %arg6: memref<512x128xf32, #tpu.memory_space<vmem>>, %arg7: memref<1x128xf32, #tpu.memory_space<vmem>>, %arg8: memref<8x128xf32, #tpu.memory_space<vmem>>) attributes {dimension_semantics = [#tpu.dimension_semantics<parallel>], iteration_bounds = array<i64: 1>, scalar_prefetch = 0 : i64, scratch_operands = 0 : i64, tpu.core_type = #tpu.core_type<tc>, window_params = [{transform_indices = @transform_0, window_bounds = array<i64: 8, 256>}, {pipeline_mode = #tpu.pipeline_mode<synchronous>, transform_indices = @transform_1, window_bounds = array<i64: 256, 512>}, {pipeline_mode = #tpu.pipeline_mode<synchronous>, transform_indices = @transform_2, window_bounds = array<i64: 1, 512>}, {pipeline_mode = #tpu.pipeline_mode<synchronous>, transform_indices = @transform_3, window_bounds = array<i64: 512, 512>}, {pipeline_mode = #tpu.pipeline_mode<synchronous>, transform_indices = @transform_4, window_bounds = array<i64: 1, 512>}, {pipeline_mode = #tpu.pipeline_mode<synchronous>, transform_indices = @transform_5, window_bounds = array<i64: 512, 128>}, {pipeline_mode = #tpu.pipeline_mode<synchronous>, transform_indices = @transform_6, window_bounds = array<i64: 1, 128>}, {transform_indices = @transform_7, window_bounds = array<i64: 8, 128>}]} {
    %c0 = arith.constant 0 : index
    %c0_0 = arith.constant 0 : index
    %0 = vector.load %arg1[%c0, %c0_0] : memref<8x256xf32, #tpu.memory_space<vmem>>, vector<8x256xf32>
    %c0_1 = arith.constant 0 : index
    %c0_2 = arith.constant 0 : index
    %1 = vector.load %arg2[%c0_1, %c0_2] : memref<256x512xf32, #tpu.memory_space<vmem>>, vector<256x512xf32>
    %cst = arith.constant dense<0.000000e+00> : vector<8x512xf32>
    %2 = tpu.matmul %0, %1, %cst {dimension_numbers = #tpu.dot_dimension_numbers<[1], [0], [0], [1], [0, 0, 1, 1], [], []>} : vector<8x256xf32>, vector<256x512xf32>, vector<8x512xf32> -> vector<8x512xf32>
    %c0_3 = arith.constant 0 : index
    %c0_4 = arith.constant 0 : index
    %3 = vector.load %arg3[%c0_3, %c0_4] : memref<1x512xf32, #tpu.memory_space<vmem>>, vector<1x512xf32>
    %4 = vector.broadcast %3 : vector<1x512xf32> to vector<8x512xf32>
    %5 = arith.addf %2, %4 : vector<8x512xf32>
    %cst_5 = arith.constant 0.000000e+00 : f32
    %6 = vector.broadcast %cst_5 : f32 to vector<8x512xf32>
    %7 = arith.maximumf %5, %6 : vector<8x512xf32>
    %c0_6 = arith.constant 0 : index
    %c0_7 = arith.constant 0 : index
    %8 = vector.load %arg4[%c0_6, %c0_7] : memref<512x512xf32, #tpu.memory_space<vmem>>, vector<512x512xf32>
    %cst_8 = arith.constant dense<0.000000e+00> : vector<8x512xf32>
    %9 = tpu.matmul %7, %8, %cst_8 {dimension_numbers = #tpu.dot_dimension_numbers<[1], [0], [0], [1], [0, 0, 1, 1], [], []>} : vector<8x512xf32>, vector<512x512xf32>, vector<8x512xf32> -> vector<8x512xf32>
    %c0_9 = arith.constant 0 : index
    %c0_10 = arith.constant 0 : index
    %10 = vector.load %arg5[%c0_9, %c0_10] : memref<1x512xf32, #tpu.memory_space<vmem>>, vector<1x512xf32>
    %11 = vector.broadcast %10 : vector<1x512xf32> to vector<8x512xf32>
    %12 = arith.addf %9, %11 : vector<8x512xf32>
    %cst_11 = arith.constant 0.000000e+00 : f32
    %13 = vector.broadcast %cst_11 : f32 to vector<8x512xf32>
    %14 = arith.maximumf %12, %13 : vector<8x512xf32>
    %c0_12 = arith.constant 0 : index
    %c0_13 = arith.constant 0 : index
    %15 = vector.load %arg6[%c0_12, %c0_13] : memref<512x128xf32, #tpu.memory_space<vmem>>, vector<512x128xf32>
    %cst_14 = arith.constant dense<0.000000e+00> : vector<8x128xf32>
    %16 = tpu.matmul %14, %15, %cst_14 {dimension_numbers = #tpu.dot_dimension_numbers<[1], [0], [0], [1], [0, 0, 1, 1], [], []>} : vector<8x512xf32>, vector<512x128xf32>, vector<8x128xf32> -> vector<8x128xf32>
    %c0_15 = arith.constant 0 : index
    %c0_16 = arith.constant 0 : index
    %17 = vector.load %arg7[%c0_15, %c0_16] : memref<1x128xf32, #tpu.memory_space<vmem>>, vector<1x128xf32>
    %18 = vector.broadcast %17 : vector<1x128xf32> to vector<8x128xf32>
    %19 = arith.addf %16, %18 : vector<8x128xf32>
    %c0_17 = arith.constant 0 : index
    %c0_18 = arith.constant 0 : index
    %20 = vector.load %arg8[%c0_17, %c0_18] : memref<8x128xf32, #tpu.memory_space<vmem>>, vector<8x128xf32>
    tpu.vector_store %arg8[%c0_17, %c0_18], %19 {strides = array<i32>} : memref<8x128xf32, #tpu.memory_space<vmem>>, vector<8x128xf32>,
    return
  }
  func.func @transform_0(%arg0: i32) -> (i32, i32) {
    %c0_i32 = arith.constant 0 : i32
    %c0_i32_0 = arith.constant 0 : i32
    return %arg0, %c0_i32 : i32, i32
  }
  func.func @transform_1(%arg0: i32) -> (i32, i32) {
    %c0_i32 = arith.constant 0 : i32
    %c0_i32_0 = arith.constant 0 : i32
    %c0_i32_1 = arith.constant 0 : i32
    return %c0_i32, %c0_i32_0 : i32, i32
  }
  func.func @transform_2(%arg0: i32) -> (i32, i32) {
    %c0_i32 = arith.constant 0 : i32
    %c0_i32_0 = arith.constant 0 : i32
    %c0_i32_1 = arith.constant 0 : i32
    return %c0_i32, %c0_i32_0 : i32, i32
  }
  func.func @transform_3(%arg0: i32) -> (i32, i32) {
    %c0_i32 = arith.constant 0 : i32
    %c0_i32_0 = arith.constant 0 : i32
    %c0_i32_1 = arith.constant 0 : i32
    return %c0_i32, %c0_i32_0 : i32, i32
  }
  func.func @transform_4(%arg0: i32) -> (i32, i32) {
    %c0_i32 = arith.constant 0 : i32
    %c0_i32_0 = arith.constant 0 : i32
    %c0_i32_1 = arith.constant 0 : i32
    return %c0_i32, %c0_i32_0 : i32, i32
  }
  func.func @transform_5(%arg0: i32) -> (i32, i32) {
    %c0_i32 = arith.constant 0 : i32
    %c0_i32_0 = arith.constant 0 : i32
    %c0_i32_1 = arith.constant 0 : i32
    return %c0_i32, %c0_i32_0 : i32, i32
  }
  func.func @transform_6(%arg0: i32) -> (i32, i32) {
    %c0_i32 = arith.constant 0 : i32
    %c0_i32_0 = arith.constant 0 : i32
    %c0_i32_1 = arith.constant 0 : i32
    return %c0_i32, %c0_i32_0 : i32, i32
  }
  func.func @transform_7(%arg0: i32) -> (i32, i32) {
    %c0_i32 = arith.constant 0 : i32
    %c0_i32_0 = arith.constant 0 : i32
    return %arg0, %c0_i32 : i32, i32
  }
}

</mosaic_0001>

<bundles_post_ra>
// kernel: tpu_custom_call.1
= control target key start
LH: loop header
LB: loop body
LE: loop exit
PB: predicated region body
PF: predicated region fallthrough
CT: control target
= control target key end

     0   :  { %12 = vsyncpa [#allocation3], 0  ;;  %s1491_s0 = inlined_call_operand.hbm [shape: f32[8,256], index: 0, kind: input, shape index: {}]   ;;  %s1492_s1 = inlined_call_operand.hbm [shape: f32[256,512], index: 1, kind: input, shape index: {}]   ;;  %s1493_s2 = inlined_call_operand.hbm [shape: f32[1,512], index: 2, kind: input, shape index: {}]   ;;  %s1494_s3 = inlined_call_operand.hbm [shape: f32[512,512], index: 3, kind: input, shape index: {}]   ;;  %s1495_s4 = inlined_call_operand.hbm [shape: f32[1,512], index: 4, kind: input, shape index: {}]   ;;  %s1496_s5 = inlined_call_operand.hbm [shape: f32[512,128], index: 5, kind: input, shape index: {}]   ;;  %s1497_s6 = inlined_call_operand.vmem [shape: f32[1,128], index: 6, kind: input, shape index: {}]   ;;  %s1498_s7 = inlined_call_operand.hbm [shape: f32[8,128], index: 7, kind: output, shape index: {}]  }
   0x1   :  { %13 = vsyncpa [#allocation6], 0 }
   0x2   :  { %14 = vsyncpa [#allocation9], 0 }
   0x3   :  { %15 = vsyncpa [#allocation12], 0  ;;  %s32_s26 = sshll.u32 %s1492_s1, 4  ;;  %s33_s26 = int_to_ptr.hbm [resolvable:$true] %s32_s26 }
   0x4   :  { %16 = vsyncpa [#allocation4], 0  ;;  %s1368_s27 = smov [#allocation5]   ;;  %s56_s8 = sshll.u32 %s1494_s3, 4  ;;  %s57_s8 = int_to_ptr.hbm [resolvable:$true] %s56_s8 }
   0x5   :  { %s34_s28 = sshll.u32 %s1368_s27, 4  ;;  %s1369_s9 = smov 512   ;;  %s35_s28 = int_to_ptr.vmem [resolvable:$true] %s34_s28 }
   0x6   :  { %s1370_s10 = smov 32   ;;  %s1371_s11 = smov [#allocation8]  }
   0x7   :  { %40 = dma.hbm_to_vmem [thread:$0]  %s33_s26, 16384, %s35_s28, [#allocation6], %s1369_s9, %s1369_s9, %s1370_s10  }
   0x8   :  { %s58_s12 = sshll.u32 %s1371_s11, 4  ;;  %s22_s15 = sshll.u32 %s1491_s0, 4  ;;  %s59_s12 = int_to_ptr.vmem [resolvable:$true] %s58_s12  ;;  %s23_s15 = int_to_ptr.hbm [resolvable:$true] %s22_s15 }
   0x9   :  { %64 = dma.hbm_to_vmem [thread:$0]  %s57_s8, 32768, %s59_s12, [#allocation9], %s1369_s9, %s1369_s9, %s1370_s10  }
   0xa   :  { %s46_s17 = sshll.u32 %s1493_s2, 4  ;;  %s1372_s18 = smov [#allocation2]   ;;  %s47_s17 = int_to_ptr.hbm [resolvable:$true] %s46_s17 }
   0xb   :  { %s24_s19 = sshll.u32 %s1372_s18, 4  ;;  %s1373_s3 = smov [#allocation7]   ;;  %s25_s19 = int_to_ptr.vmem [resolvable:$true] %s24_s19 }
   0xc   :  { %27 = dma.hbm_to_vmem [thread:$0]  %s23_s15, 256, %s25_s19, [#allocation3]  }
   0xd   :  { %s48_s20 = sshll.u32 %s1373_s3, 4  ;;  %s70_s23 = sshll.u32 %s1495_s4, 4  ;;  %s49_s20 = int_to_ptr.vmem [resolvable:$true] %s48_s20  ;;  %s71_s23 = int_to_ptr.hbm [resolvable:$true] %s70_s23 }
   0xe   :  { %51 = dma.hbm_to_vmem [thread:$0]  %s47_s17, 64, %s49_s20, [#allocation6]  }
   0xf   :  { %s80_s25 = sshll.u32 %s1496_s5, 4  ;;  %s1374_s26 = smov [#allocation10]   ;;  %s81_s25 = int_to_ptr.hbm [resolvable:$true] %s80_s25 }
  0x10   :  { %s72_s2 = sshll.u32 %s1374_s26, 4  ;;  %s1375_s27 = smov [#allocation11]   ;;  %s73_s2 = int_to_ptr.vmem [resolvable:$true] %s72_s2 }
  0x11   :  { %75 = dma.hbm_to_vmem [thread:$0]  %s71_s23, 64, %s73_s2, [#allocation9]  }
  0x12   :  { %s82_s28 = sshll.u32 %s1375_s27, 4  ;;  %s1376_s29 = smov 128   ;;  %s83_s28 = int_to_ptr.vmem [resolvable:$true] %s82_s28 }
  0x13   :  { %s1377_s30 = smov 8  }
  0x14   :  { %88 = dma.hbm_to_vmem [thread:$0]  %s81_s25, 8192, %s83_s28, [#allocation12], %s1376_s29, %s1376_s29, %s1377_s30  }
  0x15   :  { %1358 = dma.done.wait [#allocation3], 256  }
  0x16   :  { %1359 = vsyncadd [#allocation3], 4294967040 }
  0x17   :  { %1360 = dma.done.wait [#allocation6], 16448  }
  0x18   :  { %1361 = vsyncadd [#allocation6], 4294950848 }
  0x19   :  { %1362 = dma.done.wait [#allocation9], 32832  }
  0x1a   :  { %1363 = vsyncadd [#allocation9], 4294934464 }
  0x1b   :  { %1364 = dma.done.wait [#allocation12], 8192  }
  0x1c   :  { %1365 = vsyncadd [#allocation12], 4294959104  ;;  %v177_v0 = vld [vmem:[#allocation5 + $0x1e0] sm:$0xff]  ;;  %v178_v1 = vld [vmem:[#allocation5 + $0x1e8] sm:$0xff]  ;;  %s1378_s8 = smov [#allocation13]   ;;  %s1165_s12 = sshll.u32 %s1498_s7, 4  ;;  %s1166_s12 = int_to_ptr.hbm [resolvable:$true] %s1165_s12 }
  0x1d   :  { %v173_v2 = vld [vmem:[#allocation5 + $0x1c0] sm:$0xff]  ;;  %255 = vmatpush.msra.mxu0 %v177_v0  ;;  %295 = vmatpush.msra.mxu2 %v178_v1  ;;  %v174_v4 = vld [vmem:[#allocation5 + $0x1c8] sm:$0xff]  ;;  %v1437_v62 = vld [vmem:[#allocation2] sm:$0xff]  ;;  %s1163_s9 = sshll.u32 %s1378_s8, 4  ;;  %s1164_s9 = int_to_ptr.vmem [resolvable:$true] %s1163_s9 }
  0x1e   :  { %v241_v3 = vld [vmem:[#allocation5 + $0x3e0] sm:$0xff]  ;;  %v242_v5 = vld [vmem:[#allocation5 + $0x3e8] sm:$0xff]  ;;  %v179_v63 = vld [vmem:[#allocation5 + $0x1f0] sm:$0xff] }
  0x1f   :  { %275 = vmatpush.msra.mxu1 %v241_v3  ;;  %315 = vmatpush.msra.mxu3 %v242_v5  ;;  %v169_v6 = vld [vmem:[#allocation5 + $0x1a0] sm:$0xff]  ;;  %v170_v8 = vld [vmem:[#allocation5 + $0x1a8] sm:$0xff]  ;;  %v180_v0 = vld [vmem:[#allocation5 + $0x1f8] sm:$0xff] }
  0x20   :  { %v237_v7 = vld [vmem:[#allocation5 + $0x3c0] sm:$0xff]  ;;  %256 = vmatpush.msra.mxu0 %v173_v2  ;;  %296 = vmatpush.msra.mxu2 %v174_v4  ;;  %v238_v9 = vld [vmem:[#allocation5 + $0x3c8] sm:$0xff]  ;;  %v1441_v3 = vld [vmem:[#allocation2 + $0x8] sm:$0xff] }
  0x21   :  { %v233_v10 = vld [vmem:[#allocation5 + $0x3a0] sm:$0xff]  ;;  %276 = vmatpush.msra.mxu1 %v237_v7  ;;  %316 = vmatpush.msra.mxu3 %v238_v9  ;;  %v166_v12 = vld [vmem:[#allocation5 + $0x188] sm:$0xff]  ;;  %v175_v4 = vld [vmem:[#allocation5 + $0x1d0] sm:$0xff] }
  0x22   :  { %v165_v11 = vld [vmem:[#allocation5 + $0x180] sm:$0xff]  ;;  %v234_v13 = vld [vmem:[#allocation5 + $0x3a8] sm:$0xff]  ;;  %257 = vmatpush.msra.mxu0 %v169_v6  ;;  %297 = vmatpush.msra.mxu2 %v170_v8  ;;  %v243_v5 = vld [vmem:[#allocation5 + $0x3f0] sm:$0xff] }
  0x23   :  { %v229_v14 = vld [vmem:[#allocation5 + $0x380] sm:$0xff]  ;;  %v230_v15 = vld [vmem:[#allocation5 + $0x388] sm:$0xff]  ;;  %277 = vmatpush.msra.mxu1 %v233_v10  ;;  %317 = vmatpush.msra.mxu3 %v234_v13  ;;  %v176_v6 = vld [vmem:[#allocation5 + $0x1d8] sm:$0xff] }
  0x24   :  { %v161_v16 = vld [vmem:[#allocation5 + $0x160] sm:$0xff]  ;;  %v162_v17 = vld [vmem:[#allocation5 + $0x168] sm:$0xff]  ;;  %258 = vmatpush.msra.mxu0 %v165_v11  ;;  %298 = vmatpush.msra.mxu2 %v166_v12  ;;  %v244_v7 = vld [vmem:[#allocation5 + $0x3f8] sm:$0xff] }
  0x25   :  { %v225_v18 = vld [vmem:[#allocation5 + $0x360] sm:$0xff]  ;;  %v226_v19 = vld [vmem:[#allocation5 + $0x368] sm:$0xff]  ;;  %278 = vmatpush.msra.mxu1 %v229_v14  ;;  %318 = vmatpush.msra.mxu3 %v230_v15  ;;  %v171_v8 = vld [vmem:[#allocation5 + $0x1b0] sm:$0xff] }
  0x26   :  { %v157_v20 = vld [vmem:[#allocation5 + $0x140] sm:$0xff]  ;;  %v158_v21 = vld [vmem:[#allocation5 + $0x148] sm:$0xff]  ;;  %259 = vmatpush.msra.mxu0 %v161_v16  ;;  %299 = vmatpush.msra.mxu2 %v162_v17  ;;  %v239_v9 = vld [vmem:[#allocation5 + $0x3d0] sm:$0xff] }
  0x27   :  { %v221_v22 = vld [vmem:[#allocation5 + $0x340] sm:$0xff]  ;;  %v222_v23 = vld [vmem:[#allocation5 + $0x348] sm:$0xff]  ;;  %279 = vmatpush.msra.mxu1 %v225_v18  ;;  %319 = vmatpush.msra.mxu3 %v226_v19  ;;  %v172_v10 = vld [vmem:[#allocation5 + $0x1b8] sm:$0xff] }
  0x28   :  { %v153_v24 = vld [vmem:[#allocation5 + $0x120] sm:$0xff]  ;;  %v154_v25 = vld [vmem:[#allocation5 + $0x128] sm:$0xff]  ;;  %260 = vmatpush.msra.mxu0 %v157_v20  ;;  %300 = vmatpush.msra.mxu2 %v158_v21  ;;  %v240_v11 = vld [vmem:[#allocation5 + $0x3d8] sm:$0xff] }
  0x29   :  { %v217_v26 = vld [vmem:[#allocation5 + $0x320] sm:$0xff]  ;;  %v218_v27 = vld [vmem:[#allocation5 + $0x328] sm:$0xff]  ;;  %280 = vmatpush.msra.mxu1 %v221_v22  ;;  %320 = vmatpush.msra.mxu3 %v222_v23  ;;  %v167_v12 = vld [vmem:[#allocation5 + $0x190] sm:$0xff] }
  0x2a   :  { %v149_v28 = vld [vmem:[#allocation5 + $0x100] sm:$0xff]  ;;  %v150_v29 = vld [vmem:[#allocation5 + $0x108] sm:$0xff]  ;;  %261 = vmatpush.msra.mxu0 %v153_v24  ;;  %301 = vmatpush.msra.mxu2 %v154_v25  ;;  %v235_v13 = vld [vmem:[#allocation5 + $0x3b0] sm:$0xff] }
  0x2b   :  { %v213_v30 = vld [vmem:[#allocation5 + $0x300] sm:$0xff]  ;;  %v214_v31 = vld [vmem:[#allocation5 + $0x308] sm:$0xff]  ;;  %281 = vmatpush.msra.mxu1 %v217_v26  ;;  %321 = vmatpush.msra.mxu3 %v218_v27  ;;  %v168_v14 = vld [vmem:[#allocation5 + $0x198] sm:$0xff] }
  0x2c   :  { %v145_v32 = vld [vmem:[#allocation5 + $0xe0] sm:$0xff]  ;;  %v146_v33 = vld [vmem:[#allocation5 + $0xe8] sm:$0xff]  ;;  %262 = vmatpush.msra.mxu0 %v149_v28  ;;  %302 = vmatpush.msra.mxu2 %v150_v29  ;;  %v236_v15 = vld [vmem:[#allocation5 + $0x3b8] sm:$0xff] }
  0x2d   :  { %v209_v34 = vld [vmem:[#allocation5 + $0x2e0] sm:$0xff]  ;;  %v210_v35 = vld [vmem:[#allocation5 + $0x2e8] sm:$0xff]  ;;  %282 = vmatpush.msra.mxu1 %v213_v30  ;;  %322 = vmatpush.msra.mxu3 %v214_v31  ;;  %v163_v16 = vld [vmem:[#allocation5 + $0x170] sm:$0xff] }
  0x2e   :  { %v141_v36 = vld [vmem:[#allocation5 + $0xc0] sm:$0xff]  ;;  %v142_v37 = vld [vmem:[#allocation5 + $0xc8] sm:$0xff]  ;;  %263 = vmatpush.msra.mxu0 %v145_v32  ;;  %303 = vmatpush.msra.mxu2 %v146_v33  ;;  %v231_v17 = vld [vmem:[#allocation5 + $0x390] sm:$0xff] }
  0x2f   :  { %v205_v38 = vld [vmem:[#allocation5 + $0x2c0] sm:$0xff]  ;;  %v206_v39 = vld [vmem:[#allocation5 + $0x2c8] sm:$0xff]  ;;  %283 = vmatpush.msra.mxu1 %v209_v34  ;;  %323 = vmatpush.msra.mxu3 %v210_v35  ;;  %v164_v18 = vld [vmem:[#allocation5 + $0x178] sm:$0xff] }
  0x30   :  { %v137_v40 = vld [vmem:[#allocation5 + $0xa0] sm:$0xff]  ;;  %v138_v41 = vld [vmem:[#allocation5 + $0xa8] sm:$0xff]  ;;  %264 = vmatpush.msra.mxu0 %v141_v36  ;;  %304 = vmatpush.msra.mxu2 %v142_v37  ;;  %v232_v19 = vld [vmem:[#allocation5 + $0x398] sm:$0xff] }
  0x31   :  { %v201_v42 = vld [vmem:[#allocation5 + $0x2a0] sm:$0xff]  ;;  %v202_v43 = vld [vmem:[#allocation5 + $0x2a8] sm:$0xff]  ;;  %284 = vmatpush.msra.mxu1 %v205_v38  ;;  %324 = vmatpush.msra.mxu3 %v206_v39  ;;  %v159_v20 = vld [vmem:[#allocation5 + $0x150] sm:$0xff] }
  0x32   :  { %v133_v44 = vld [vmem:[#allocation5 + $0x80] sm:$0xff]  ;;  %v134_v45 = vld [vmem:[#allocation5 + $0x88] sm:$0xff]  ;;  %265 = vmatpush.msra.mxu0 %v137_v40  ;;  %305 = vmatpush.msra.mxu2 %v138_v41  ;;  %v227_v21 = vld [vmem:[#allocation5 + $0x370] sm:$0xff] }
  0x33   :  { %v197_v46 = vld [vmem:[#allocation5 + $0x280] sm:$0xff]  ;;  %v198_v47 = vld [vmem:[#allocation5 + $0x288] sm:$0xff]  ;;  %285 = vmatpush.msra.mxu1 %v201_v42  ;;  %325 = vmatpush.msra.mxu3 %v202_v43  ;;  %v160_v22 = vld [vmem:[#allocation5 + $0x158] sm:$0xff] }
  0x34   :  { %v129_v48 = vld [vmem:[#allocation5 + $0x60] sm:$0xff]  ;;  %v130_v49 = vld [vmem:[#allocation5 + $0x68] sm:$0xff]  ;;  %266 = vmatpush.msra.mxu0 %v133_v44  ;;  %306 = vmatpush.msra.mxu2 %v134_v45  ;;  %v228_v23 = vld [vmem:[#allocation5 + $0x378] sm:$0xff] }
  0x35   :  { %v193_v50 = vld [vmem:[#allocation5 + $0x260] sm:$0xff]  ;;  %v194_v51 = vld [vmem:[#allocation5 + $0x268] sm:$0xff]  ;;  %286 = vmatpush.msra.mxu1 %v197_v46  ;;  %326 = vmatpush.msra.mxu3 %v198_v47  ;;  %v155_v24 = vld [vmem:[#allocation5 + $0x130] sm:$0xff] }
  0x36   :  { %v125_v52 = vld [vmem:[#allocation5 + $0x40] sm:$0xff]  ;;  %v126_v53 = vld [vmem:[#allocation5 + $0x48] sm:$0xff]  ;;  %267 = vmatpush.msra.mxu0 %v129_v48  ;;  %307 = vmatpush.msra.mxu2 %v130_v49  ;;  %v223_v25 = vld [vmem:[#allocation5 + $0x350] sm:$0xff] }
  0x37   :  { %v189_v54 = vld [vmem:[#allocation5 + $0x240] sm:$0xff]  ;;  %v190_v55 = vld [vmem:[#allocation5 + $0x248] sm:$0xff]  ;;  %287 = vmatpush.msra.mxu1 %v193_v50  ;;  %327 = vmatpush.msra.mxu3 %v194_v51  ;;  %v156_v26 = vld [vmem:[#allocation5 + $0x138] sm:$0xff] }
  0x38   :  { %v121_v56 = vld [vmem:[#allocation5 + $0x20] sm:$0xff]  ;;  %v122_v57 = vld [vmem:[#allocation5 + $0x28] sm:$0xff]  ;;  %268 = vmatpush.msra.mxu0 %v125_v52  ;;  %308 = vmatpush.msra.mxu2 %v126_v53  ;;  %v224_v27 = vld [vmem:[#allocation5 + $0x358] sm:$0xff] }
  0x39   :  { %v185_v58 = vld [vmem:[#allocation5 + $0x220] sm:$0xff]  ;;  %v186_v59 = vld [vmem:[#allocation5 + $0x228] sm:$0xff]  ;;  %288 = vmatpush.msra.mxu1 %v189_v54  ;;  %328 = vmatpush.msra.mxu3 %v190_v55  ;;  %v151_v28 = vld [vmem:[#allocation5 + $0x110] sm:$0xff] }
  0x3a   :  { %v117_v60 = vld [vmem:[#allocation5] sm:$0xff]  ;;  %v118_v61 = vld [vmem:[#allocation5 + $0x8] sm:$0xff]  ;;  %269 = vmatpush.msra.mxu0 %v121_v56  ;;  %309 = vmatpush.msra.mxu2 %v122_v57  ;;  %v219_v29 = vld [vmem:[#allocation5 + $0x330] sm:$0xff] }
  0x3b   :  { %289 = vmatpush.msra.mxu1 %v185_v58  ;;  %329 = vmatpush.msra.mxu3 %v186_v59  ;;  %v181_v1 = vld [vmem:[#allocation5 + $0x200] sm:$0xff]  ;;  %v182_v2 = vld [vmem:[#allocation5 + $0x208] sm:$0xff]  ;;  %v152_v30 = vld [vmem:[#allocation5 + $0x118] sm:$0xff] }
  0x3c   :  { %270 = vmatpush.msra.mxu0 %v117_v60  ;;  %310 = vmatpush.msra.mxu2 %v118_v61  ;;  %v220_v31 = vld [vmem:[#allocation5 + $0x338] sm:$0xff]  ;;  %v147_v32 = vld [vmem:[#allocation5 + $0xf0] sm:$0xff] }
  0x3d   :  { %271 = vmatmul.f32.vlgmr.msra.gmra.mxu0 %v1437_v62  ;;  %311 = vmatmul.f32.vlgmr.msra.gmra.mxu2 %v1437_v62  ;;  %v215_v33 = vld [vmem:[#allocation5 + $0x310] sm:$0xff]  ;;  %v148_v34 = vld [vmem:[#allocation5 + $0xf8] sm:$0xff] }
  0x3e   :  { %335 = vmatpush.msrb.mxu0 %v179_v63  ;;  %375 = vmatpush.msrb.mxu2 %v180_v0  ;;  %v216_v35 = vld [vmem:[#allocation5 + $0x318] sm:$0xff]  ;;  %v143_v36 = vld [vmem:[#allocation5 + $0xd0] sm:$0xff] }
  0x3f   :  { %290 = vmatpush.msra.mxu1 %v181_v1  ;;  %330 = vmatpush.msra.mxu3 %v182_v2  ;;  %v211_v37 = vld [vmem:[#allocation5 + $0x2f0] sm:$0xff]  ;;  %v144_v38 = vld [vmem:[#allocation5 + $0xd8] sm:$0xff] }
  0x40   :  { %291 = vmatmul.f32.vlgmr.msra.gmra.mxu1 %v1441_v3  ;;  %331 = vmatmul.f32.vlgmr.msra.gmra.mxu3 %v1441_v3  ;;  %v212_v39 = vld [vmem:[#allocation5 + $0x2f8] sm:$0xff]  ;;  %v139_v40 = vld [vmem:[#allocation5 + $0xb0] sm:$0xff] }
  0x41   :  { %336 = vmatpush.msrb.mxu0 %v175_v4  ;;  %355 = vmatpush.msrb.mxu1 %v243_v5  ;;  %v207_v41 = vld [vmem:[#allocation5 + $0x2d0] sm:$0xff]  ;;  %v140_v42 = vld [vmem:[#allocation5 + $0xb8] sm:$0xff]  ;;  %v479_v4 = vld [vmem:[#allocation8 + $0x1e0] sm:$0xff] }
  0x42   :  { %376 = vmatpush.msrb.mxu2 %v176_v6  ;;  %395 = vmatpush.msrb.mxu3 %v244_v7  ;;  %v208_v43 = vld [vmem:[#allocation5 + $0x2d8] sm:$0xff]  ;;  %v135_v44 = vld [vmem:[#allocation5 + $0x90] sm:$0xff]  ;;  %v543_v5 = vld [vmem:[#allocation8 + $0x3e0] sm:$0xff] }
  0x43   :  { %337 = vmatpush.msrb.mxu0 %v171_v8  ;;  %356 = vmatpush.msrb.mxu1 %v239_v9  ;;  %v203_v45 = vld [vmem:[#allocation5 + $0x2b0] sm:$0xff]  ;;  %v136_v46 = vld [vmem:[#allocation5 + $0x98] sm:$0xff]  ;;  %v607_v6 = vld [vmem:[#allocation8 + $0x5e0] sm:$0xff] }
  0x44   :  { %377 = vmatpush.msrb.mxu2 %v172_v10  ;;  %396 = vmatpush.msrb.mxu3 %v240_v11  ;;  %v204_v47 = vld [vmem:[#allocation5 + $0x2b8] sm:$0xff]  ;;  %v131_v48 = vld [vmem:[#allocation5 + $0x70] sm:$0xff]  ;;  %v475_v7 = vld [vmem:[#allocation8 + $0x1c0] sm:$0xff] }
  0x45   :  { %338 = vmatpush.msrb.mxu0 %v167_v12  ;;  %357 = vmatpush.msrb.mxu1 %v235_v13  ;;  %v199_v49 = vld [vmem:[#allocation5 + $0x290] sm:$0xff]  ;;  %v132_v50 = vld [vmem:[#allocation5 + $0x78] sm:$0xff]  ;;  %v539_v8 = vld [vmem:[#allocation8 + $0x3c0] sm:$0xff] }
  0x46   :  { %378 = vmatpush.msrb.mxu2 %v168_v14  ;;  %397 = vmatpush.msrb.mxu3 %v236_v15  ;;  %v200_v51 = vld [vmem:[#allocation5 + $0x298] sm:$0xff]  ;;  %v127_v52 = vld [vmem:[#allocation5 + $0x50] sm:$0xff]  ;;  %v603_v9 = vld [vmem:[#allocation8 + $0x5c0] sm:$0xff] }
  0x47   :  { %339 = vmatpush.msrb.mxu0 %v163_v16  ;;  %358 = vmatpush.msrb.mxu1 %v231_v17  ;;  %v195_v53 = vld [vmem:[#allocation5 + $0x270] sm:$0xff]  ;;  %v128_v54 = vld [vmem:[#allocation5 + $0x58] sm:$0xff]  ;;  %v471_v10 = vld [vmem:[#allocation8 + $0x1a0] sm:$0xff] }
  0x48   :  { %379 = vmatpush.msrb.mxu2 %v164_v18  ;;  %398 = vmatpush.msrb.mxu3 %v232_v19  ;;  %v196_v55 = vld [vmem:[#allocation5 + $0x278] sm:$0xff]  ;;  %v123_v56 = vld [vmem:[#allocation5 + $0x30] sm:$0xff]  ;;  %v535_v11 = vld [vmem:[#allocation8 + $0x3a0] sm:$0xff] }
  0x49   :  { %340 = vmatpush.msrb.mxu0 %v159_v20  ;;  %359 = vmatpush.msrb.mxu1 %v227_v21  ;;  %v191_v57 = vld [vmem:[#allocation5 + $0x250] sm:$0xff]  ;;  %v124_v58 = vld [vmem:[#allocation5 + $0x38] sm:$0xff]  ;;  %v467_v12 = vld [vmem:[#allocation8 + $0x180] sm:$0xff] }
  0x4a   :  { %380 = vmatpush.msrb.mxu2 %v160_v22  ;;  %399 = vmatpush.msrb.mxu3 %v228_v23  ;;  %v192_v59 = vld [vmem:[#allocation5 + $0x258] sm:$0xff]  ;;  %v119_v60 = vld [vmem:[#allocation5 + $0x10] sm:$0xff]  ;;  %v531_v13 = vld [vmem:[#allocation8 + $0x380] sm:$0xff] }
  0x4b   :  { %341 = vmatpush.msrb.mxu0 %v155_v24  ;;  %360 = vmatpush.msrb.mxu1 %v223_v25  ;;  %v187_v61 = vld [vmem:[#allocation5 + $0x230] sm:$0xff]  ;;  %v120_v63 = vld [vmem:[#allocation5 + $0x18] sm:$0xff]  ;;  %v671_v14 = vld [vmem:[#allocation8 + $0x7e0] sm:$0xff] }
  0x4c   :  { %381 = vmatpush.msrb.mxu2 %v156_v26  ;;  %400 = vmatpush.msrb.mxu3 %v224_v27  ;;  %v188_v0 = vld [vmem:[#allocation5 + $0x238] sm:$0xff]  ;;  %v183_v1 = vld [vmem:[#allocation5 + $0x210] sm:$0xff]  ;;  %v595_v15 = vld [vmem:[#allocation8 + $0x580] sm:$0xff] }
  0x4d   :  { %342 = vmatpush.msrb.mxu0 %v151_v28  ;;  %361 = vmatpush.msrb.mxu1 %v219_v29  ;;  %v184_v2 = vld [vmem:[#allocation5 + $0x218] sm:$0xff]  ;;  %v463_v16 = vld [vmem:[#allocation8 + $0x160] sm:$0xff] }
  0x4e   :  { %382 = vmatpush.msrb.mxu2 %v152_v30  ;;  %401 = vmatpush.msrb.mxu3 %v220_v31  ;;  %v667_v17 = vld [vmem:[#allocation8 + $0x7c0] sm:$0xff] }
  0x4f   :  { %343 = vmatpush.msrb.mxu0 %v147_v32  ;;  %362 = vmatpush.msrb.mxu1 %v215_v33  ;;  %v591_v18 = vld [vmem:[#allocation8 + $0x560] sm:$0xff] }
  0x50   :  { %383 = vmatpush.msrb.mxu2 %v148_v34  ;;  %402 = vmatpush.msrb.mxu3 %v216_v35  ;;  %v459_v19 = vld [vmem:[#allocation8 + $0x140] sm:$0xff] }
  0x51   :  { %344 = vmatpush.msrb.mxu0 %v143_v36  ;;  %363 = vmatpush.msrb.mxu1 %v211_v37  ;;  %v523_v20 = vld [vmem:[#allocation8 + $0x340] sm:$0xff] }
  0x52   :  { %384 = vmatpush.msrb.mxu2 %v144_v38  ;;  %403 = vmatpush.msrb.mxu3 %v212_v39  ;;  %v663_v21 = vld [vmem:[#allocation8 + $0x7a0] sm:$0xff] }
  0x53   :  { %345 = vmatpush.msrb.mxu0 %v139_v40  ;;  %364 = vmatpush.msrb.mxu1 %v207_v41  ;;  %v587_v22 = vld [vmem:[#allocation8 + $0x540] sm:$0xff] }
  0x54   :  { %385 = vmatpush.msrb.mxu2 %v140_v42  ;;  %404 = vmatpush.msrb.mxu3 %v208_v43  ;;  %v455_v23 = vld [vmem:[#allocation8 + $0x120] sm:$0xff] }
  0x55   :  { %346 = vmatpush.msrb.mxu0 %v135_v44  ;;  %365 = vmatpush.msrb.mxu1 %v203_v45  ;;  %v519_v24 = vld [vmem:[#allocation8 + $0x320] sm:$0xff] }
  0x56   :  { %386 = vmatpush.msrb.mxu2 %v136_v46  ;;  %405 = vmatpush.msrb.mxu3 %v204_v47  ;;  %v659_v25 = vld [vmem:[#allocation8 + $0x780] sm:$0xff] }
  0x57   :  { %347 = vmatpush.msrb.mxu0 %v131_v48  ;;  %366 = vmatpush.msrb.mxu1 %v199_v49  ;;  %v583_v26 = vld [vmem:[#allocation8 + $0x520] sm:$0xff] }
  0x58   :  { %387 = vmatpush.msrb.mxu2 %v132_v50  ;;  %406 = vmatpush.msrb.mxu3 %v200_v51  ;;  %v451_v27 = vld [vmem:[#allocation8 + $0x100] sm:$0xff] }
  0x59   :  { %348 = vmatpush.msrb.mxu0 %v127_v52  ;;  %367 = vmatpush.msrb.mxu1 %v195_v53  ;;  %v515_v28 = vld [vmem:[#allocation8 + $0x300] sm:$0xff] }
  0x5a   :  { %388 = vmatpush.msrb.mxu2 %v128_v54  ;;  %407 = vmatpush.msrb.mxu3 %v196_v55  ;;  %v655_v29 = vld [vmem:[#allocation8 + $0x760] sm:$0xff]  ;;  %v480_v55 = vld [vmem:[#allocation8 + $0x1e8] sm:$0xff] }
  0x5b   :  { %349 = vmatpush.msrb.mxu0 %v123_v56  ;;  %368 = vmatpush.msrb.mxu1 %v191_v57  ;;  %v579_v30 = vld [vmem:[#allocation8 + $0x500] sm:$0xff]  ;;  %v544_v56 = vld [vmem:[#allocation8 + $0x3e8] sm:$0xff] }
  0x5c   :  { %389 = vmatpush.msrb.mxu2 %v124_v58  ;;  %408 = vmatpush.msrb.mxu3 %v192_v59  ;;  %v447_v31 = vld [vmem:[#allocation8 + $0xe0] sm:$0xff]  ;;  %v476_v57 = vld [vmem:[#allocation8 + $0x1c8] sm:$0xff] }
  0x5d   :  { %350 = vmatpush.msrb.mxu0 %v119_v60  ;;  %369 = vmatpush.msrb.mxu1 %v187_v61  ;;  %v511_v32 = vld [vmem:[#allocation8 + $0x2e0] sm:$0xff]  ;;  %v540_v58 = vld [vmem:[#allocation8 + $0x3c8] sm:$0xff] }
  0x5e   :  { %390 = vmatpush.msrb.mxu2 %v120_v63  ;;  %409 = vmatpush.msrb.mxu3 %v188_v0  ;;  %v651_v33 = vld [vmem:[#allocation8 + $0x740] sm:$0xff]  ;;  %v472_v59 = vld [vmem:[#allocation8 + $0x1a8] sm:$0xff] }
  0x5f   :  { %351 = vmatmul.f32.vlgmr.msrb.gmra.mxu0 %v1437_v62  ;;  %391 = vmatmul.f32.vlgmr.msrb.gmra.mxu2 %v1437_v62  ;;  %v599_v62 = vld [vmem:[#allocation8 + $0x5a0] sm:$0xff]  ;;  %v536_v60 = vld [vmem:[#allocation8 + $0x3a8] sm:$0xff] }
  0x60   :  { %370 = vmatpush.msrb.mxu1 %v183_v1  ;;  %410 = vmatpush.msrb.mxu3 %v184_v2  ;;  %v575_v34 = vld [vmem:[#allocation8 + $0x4e0] sm:$0xff]  ;;  %v468_v61 = vld [vmem:[#allocation8 + $0x188] sm:$0xff] }
  0x61   :  { %371 = vmatmul.f32.vlgmr.msrb.gmra.mxu1 %v1441_v3  ;;  %411 = vmatmul.f32.vlgmr.msrb.gmra.mxu3 %v1441_v3  ;;  %v527_v3 = vld [vmem:[#allocation8 + $0x360] sm:$0xff]  ;;  %v532_v63 = vld [vmem:[#allocation8 + $0x388] sm:$0xff] }
  0x62   :  { %685 = vmatpush.msra.mxu0 %v479_v4  ;;  %705 = vmatpush.msra.mxu1 %v543_v5  ;;  %v443_v35 = vld [vmem:[#allocation8 + $0xc0] sm:$0xff]  ;;  %v464_v0 = vld [vmem:[#allocation8 + $0x168] sm:$0xff] }
  0x63   :  { %725 = vmatpush.msra.mxu2 %v607_v6  ;;  %745 = vmatpush.msra.mxu3 %v671_v14  ;;  %v507_v36 = vld [vmem:[#allocation8 + $0x2c0] sm:$0xff]  ;;  %v528_v1 = vld [vmem:[#allocation8 + $0x368] sm:$0xff] }
  0x64   :  { %686 = vmatpush.msra.mxu0 %v475_v7  ;;  %706 = vmatpush.msra.mxu1 %v539_v8  ;;  %v647_v37 = vld [vmem:[#allocation8 + $0x720] sm:$0xff]  ;;  %v460_v2 = vld [vmem:[#allocation8 + $0x148] sm:$0xff] }
  0x65   :  { %726 = vmatpush.msra.mxu2 %v603_v9  ;;  %746 = vmatpush.msra.mxu3 %v667_v17  ;;  %v571_v38 = vld [vmem:[#allocation8 + $0x4c0] sm:$0xff]  ;;  %v524_v4 = vld [vmem:[#allocation8 + $0x348] sm:$0xff] }
  0x66   :  { %687 = vmatpush.msra.mxu0 %v471_v10  ;;  %707 = vmatpush.msra.mxu1 %v535_v11  ;;  %v439_v39 = vld [vmem:[#allocation8 + $0xa0] sm:$0xff]  ;;  %v456_v5 = vld [vmem:[#allocation8 + $0x128] sm:$0xff] }
  0x67   :  { %727 = vmatpush.msra.mxu2 %v599_v62  ;;  %747 = vmatpush.msra.mxu3 %v663_v21  ;;  %v503_v40 = vld [vmem:[#allocation8 + $0x2a0] sm:$0xff]  ;;  %v520_v6 = vld [vmem:[#allocation8 + $0x328] sm:$0xff] }
  0x68   :  { %688 = vmatpush.msra.mxu0 %v467_v12  ;;  %708 = vmatpush.msra.mxu1 %v531_v13  ;;  %v643_v41 = vld [vmem:[#allocation8 + $0x700] sm:$0xff]  ;;  %v452_v7 = vld [vmem:[#allocation8 + $0x108] sm:$0xff] }
  0x69   :  { %728 = vmatpush.msra.mxu2 %v595_v15  ;;  %748 = vmatpush.msra.mxu3 %v659_v25  ;;  %v567_v42 = vld [vmem:[#allocation8 + $0x4a0] sm:$0xff]  ;;  %v516_v8 = vld [vmem:[#allocation8 + $0x308] sm:$0xff] }
  0x6a   :  { %689 = vmatpush.msra.mxu0 %v463_v16  ;;  %709 = vmatpush.msra.mxu1 %v527_v3  ;;  %v435_v43 = vld [vmem:[#allocation8 + $0x80] sm:$0xff]  ;;  %v448_v9 = vld [vmem:[#allocation8 + $0xe8] sm:$0xff] }
  0x6b   :  { %729 = vmatpush.msra.mxu2 %v591_v18  ;;  %749 = vmatpush.msra.mxu3 %v655_v29  ;;  %v499_v44 = vld [vmem:[#allocation8 + $0x280] sm:$0xff]  ;;  %v512_v10 = vld [vmem:[#allocation8 + $0x2e8] sm:$0xff] }
  0x6c   :  { %690 = vmatpush.msra.mxu0 %v459_v19  ;;  %710 = vmatpush.msra.mxu1 %v523_v20  ;;  %v639_v45 = vld [vmem:[#allocation8 + $0x6e0] sm:$0xff]  ;;  %v444_v11 = vld [vmem:[#allocation8 + $0xc8] sm:$0xff] }
  0x6d   :  { %730 = vmatpush.msra.mxu2 %v587_v22  ;;  %750 = vmatpush.msra.mxu3 %v651_v33  ;;  %v563_v46 = vld [vmem:[#allocation8 + $0x480] sm:$0xff]  ;;  %v440_v62 = vld [vmem:[#allocation8 + $0xa8] sm:$0xff] }
  0x6e   :  { %691 = vmatpush.msra.mxu0 %v455_v23  ;;  %711 = vmatpush.msra.mxu1 %v519_v24  ;;  %v431_v47 = vld [vmem:[#allocation8 + $0x60] sm:$0xff]  ;;  %v436_v12 = vld [vmem:[#allocation8 + $0x88] sm:$0xff] }
  0x6f   :  { %731 = vmatpush.msra.mxu2 %v583_v26  ;;  %751 = vmatpush.msra.mxu3 %v647_v37  ;;  %v495_v48 = vld [vmem:[#allocation8 + $0x260] sm:$0xff]  ;;  %v432_v15 = vld [vmem:[#allocation8 + $0x68] sm:$0xff] }
  0x70   :  { %692 = vmatpush.msra.mxu0 %v451_v27  ;;  %712 = vmatpush.msra.mxu1 %v515_v28  ;;  %v427_v49 = vld [vmem:[#allocation8 + $0x40] sm:$0xff]  ;;  %v508_v16 = vld [vmem:[#allocation8 + $0x2c8] sm:$0xff] }
  0x71   :  { %732 = vmatpush.msra.mxu2 %v579_v30  ;;  %752 = vmatpush.msra.mxu3 %v643_v41  ;;  %v491_v50 = vld [vmem:[#allocation8 + $0x240] sm:$0xff]  ;;  %v428_v18 = vld [vmem:[#allocation8 + $0x48] sm:$0xff] }
  0x72   :  { %693 = vmatpush.msra.mxu0 %v447_v31  ;;  %713 = vmatpush.msra.mxu1 %v511_v32  ;;  %v423_v51 = vld [vmem:[#allocation8 + $0x20] sm:$0xff]  ;;  %v504_v19 = vld [vmem:[#allocation8 + $0x2a8] sm:$0xff] }
  0x73   :  { %733 = vmatpush.msra.mxu2 %v575_v34  ;;  %753 = vmatpush.msra.mxu3 %v639_v45  ;;  %v487_v52 = vld [vmem:[#allocation8 + $0x220] sm:$0xff]  ;;  %v424_v22 = vld [vmem:[#allocation8 + $0x28] sm:$0xff] }
  0x74   :  { %694 = vmatpush.msra.mxu0 %v443_v35  ;;  %714 = vmatpush.msra.mxu1 %v507_v36  ;;  %v419_v53 = vld [vmem:[#allocation8] sm:$0xff]  ;;  %v500_v23 = vld [vmem:[#allocation8 + $0x288] sm:$0xff] }
  0x75   :  { %734 = vmatpush.msra.mxu2 %v571_v38  ;;  %v483_v54 = vld [vmem:[#allocation8 + $0x200] sm:$0xff]  ;;  %v420_v26 = vld [vmem:[#allocation8 + $0x8] sm:$0xff] }
  0x76   :  { %695 = vmatpush.msra.mxu0 %v439_v39  ;;  %715 = vmatpush.msra.mxu1 %v503_v40  ;;  %v559_v13 = vld [vmem:[#allocation8 + $0x460] sm:$0xff]  ;;  %v496_v27 = vld [vmem:[#allocation8 + $0x268] sm:$0xff] }
  0x77   :  { %735 = vmatpush.msra.mxu2 %v567_v42  ;;  %v635_v14 = vld [vmem:[#allocation8 + $0x6c0] sm:$0xff]  ;;  %v608_v28 = vld [vmem:[#allocation8 + $0x5e8] sm:$0xff] }
  0x78   :  { %696 = vmatpush.msra.mxu0 %v435_v43  ;;  %716 = vmatpush.msra.mxu1 %v499_v44  ;;  %v555_v3 = vld [vmem:[#allocation8 + $0x440] sm:$0xff]  ;;  %v492_v30 = vld [vmem:[#allocation8 + $0x248] sm:$0xff] }
  0x79   :  { %736 = vmatpush.msra.mxu2 %v563_v46  ;;  %754 = vmatpush.msra.mxu3 %v635_v14  ;;  %v631_v17 = vld [vmem:[#allocation8 + $0x6a0] sm:$0xff]  ;;  %v604_v31 = vld [vmem:[#allocation8 + $0x5c8] sm:$0xff]  ;;  %v473_v14 = vld [vmem:[#allocation8 + $0x1b0] sm:$0xff] }
  0x7a   :  { %697 = vmatpush.msra.mxu0 %v431_v47  ;;  %717 = vmatpush.msra.mxu1 %v495_v48  ;;  %v551_v20 = vld [vmem:[#allocation8 + $0x420] sm:$0xff]  ;;  %v488_v33 = vld [vmem:[#allocation8 + $0x228] sm:$0xff] }
  0x7b   :  { %737 = vmatpush.msra.mxu2 %v559_v13  ;;  %755 = vmatpush.msra.mxu3 %v631_v17  ;;  %v627_v21 = vld [vmem:[#allocation8 + $0x680] sm:$0xff]  ;;  %v600_v34 = vld [vmem:[#allocation8 + $0x5a8] sm:$0xff]  ;;  %v545_v17 = vld [vmem:[#allocation8 + $0x3f0] sm:$0xff] }
  0x7c   :  { %698 = vmatpush.msra.mxu0 %v427_v49  ;;  %718 = vmatpush.msra.mxu1 %v491_v50  ;;  %v547_v24 = vld [vmem:[#allocation8 + $0x400] sm:$0xff]  ;;  %v484_v36 = vld [vmem:[#allocation8 + $0x208] sm:$0xff]  ;;  %v1449_v50 = vld [vmem:[#allocation7] sm:$0xf] }
  0x7d   :  { %738 = vmatpush.msra.mxu2 %v555_v3  ;;  %756 = vmatpush.msra.mxu3 %v627_v21  ;;  %v623_v25 = vld [vmem:[#allocation8 + $0x660] sm:$0xff]  ;;  %v596_v37 = vld [vmem:[#allocation8 + $0x588] sm:$0xff]  ;;  %v469_v3 = vld [vmem:[#allocation8 + $0x190] sm:$0xff] }
  0x7e   :  { %699 = vmatpush.msra.mxu0 %v423_v51  ;;  %719 = vmatpush.msra.mxu1 %v487_v52  ;;  %v619_v29 = vld [vmem:[#allocation8 + $0x640] sm:$0xff]  ;;  %v672_v38 = vld [vmem:[#allocation8 + $0x7e8] sm:$0xff] }
  0x7f   :  { %739 = vmatpush.msra.mxu2 %v551_v20  ;;  %757 = vmatpush.msra.mxu3 %v623_v25  ;;  %v615_v32 = vld [vmem:[#allocation8 + $0x620] sm:$0xff]  ;;  %v668_v39 = vld [vmem:[#allocation8 + $0x7c8] sm:$0xff]  ;;  %v541_v20 = vld [vmem:[#allocation8 + $0x3d0] sm:$0xff] }
  0x80   :  { %700 = vmatpush.msra.mxu0 %v419_v53  ;;  %720 = vmatpush.msra.mxu1 %v483_v54  ;;  %v611_v35 = vld [vmem:[#allocation8 + $0x600] sm:$0xff]  ;;  %v592_v40 = vld [vmem:[#allocation8 + $0x568] sm:$0xff]  ;;  %v247_v54 = vperm.slane %v1449_v50, 0  ;;  %v533_v25 = vld [vmem:[#allocation8 + $0x390] sm:$0xff] }
  0x81   :  { %740 = vmatpush.msra.mxu2 %v547_v24  ;;  %758 = vmatpush.msra.mxu3 %v619_v29  ;;  %v664_v41 = vld [vmem:[#allocation8 + $0x7a8] sm:$0xff]  ;;  %v457_v24 = vld [vmem:[#allocation8 + $0x130] sm:$0xff] }
  0x82   :  { %765 = vmatpush.msrb.mxu0 %v480_v55  ;;  %785 = vmatpush.msrb.mxu1 %v544_v56  ;;  %v588_v42 = vld [vmem:[#allocation8 + $0x548] sm:$0xff]  ;;  %v525_v29 = vld [vmem:[#allocation8 + $0x350] sm:$0xff] }
  0x83   :  { %805 = vmatpush.msrb.mxu2 %v608_v28  ;;  %759 = vmatpush.msra.mxu3 %v615_v32  ;;  %v660_v43 = vld [vmem:[#allocation8 + $0x788] sm:$0xff]  ;;  %v449_v28 = vld [vmem:[#allocation8 + $0xf0] sm:$0xff] }
  0x84   :  { %766 = vmatpush.msrb.mxu0 %v476_v57  ;;  %786 = vmatpush.msrb.mxu1 %v540_v58  ;;  %v584_v44 = vld [vmem:[#allocation8 + $0x528] sm:$0xff]  ;;  %v441_v32 = vld [vmem:[#allocation8 + $0xb0] sm:$0xff] }
  0x85   :  { %806 = vmatpush.msrb.mxu2 %v604_v31  ;;  %760 = vmatpush.msra.mxu3 %v611_v35  ;;  %v656_v45 = vld [vmem:[#allocation8 + $0x768] sm:$0xff]  ;;  %v521_v31 = vld [vmem:[#allocation8 + $0x330] sm:$0xff] }
  0x86   :  { %767 = vmatpush.msrb.mxu0 %v472_v59  ;;  %787 = vmatpush.msrb.mxu1 %v536_v60  ;;  %v580_v46 = vld [vmem:[#allocation8 + $0x508] sm:$0xff]  ;;  %v513_v35 = vld [vmem:[#allocation8 + $0x2f0] sm:$0xff] }
  0x87   :  { %807 = vmatpush.msrb.mxu2 %v600_v34  ;;  %825 = vmatpush.msrb.mxu3 %v672_v38  ;;  %v652_v47 = vld [vmem:[#allocation8 + $0x748] sm:$0xff]  ;;  %v437_v34 = vld [vmem:[#allocation8 + $0x90] sm:$0xff]  ;;  %v249_v38 = vperm.slane %v1449_v50, 2 }
  0x88   :  { %768 = vmatpush.msrb.mxu0 %v468_v61  ;;  %788 = vmatpush.msrb.mxu1 %v532_v63  ;;  %v576_v48 = vld [vmem:[#allocation8 + $0x4e8] sm:$0xff]  ;;  %v248_v63 = vperm.slane %v1449_v50, 1 }
  0x89   :  { %808 = vmatpush.msrb.mxu2 %v596_v37  ;;  %826 = vmatpush.msrb.mxu3 %v668_v39  ;;  %v648_v49 = vld [vmem:[#allocation8 + $0x728] sm:$0xff]  ;;  %v509_v37 = vld [vmem:[#allocation8 + $0x2d0] sm:$0xff] }
  0x8a   :  { %769 = vmatpush.msrb.mxu0 %v464_v0  ;;  %789 = vmatpush.msrb.mxu1 %v528_v1  ;;  %v572_v51 = vld [vmem:[#allocation8 + $0x4c8] sm:$0xff]  ;;  %v429_v39 = vld [vmem:[#allocation8 + $0x50] sm:$0xff] }
  0x8b   :  { %809 = vmatpush.msrb.mxu2 %v592_v40  ;;  %827 = vmatpush.msrb.mxu3 %v664_v41  ;;  %v644_v52 = vld [vmem:[#allocation8 + $0x708] sm:$0xff]  ;;  %v505_v40 = vld [vmem:[#allocation8 + $0x2b0] sm:$0xff] }
  0x8c   :  { %770 = vmatpush.msrb.mxu0 %v460_v2  ;;  %790 = vmatpush.msrb.mxu1 %v524_v4  ;;  %v568_v53 = vld [vmem:[#allocation8 + $0x4a8] sm:$0xff] }
  0x8d   :  { %810 = vmatpush.msrb.mxu2 %v588_v42  ;;  %828 = vmatpush.msrb.mxu3 %v660_v43  ;;  %v640_v55 = vld [vmem:[#allocation8 + $0x6e8] sm:$0xff]  ;;  %v425_v42 = vld [vmem:[#allocation8 + $0x30] sm:$0xff] }
  0x8e   :  { %771 = vmatpush.msrb.mxu0 %v456_v5  ;;  %791 = vmatpush.msrb.mxu1 %v520_v6  ;;  %v564_v56 = vld [vmem:[#allocation8 + $0x488] sm:$0xff]  ;;  %v501_v43 = vld [vmem:[#allocation8 + $0x290] sm:$0xff] }
  0x8f   :  { %811 = vmatpush.msrb.mxu2 %v584_v44  ;;  %829 = vmatpush.msrb.mxu3 %v656_v45  ;;  %v560_v59 = vld [vmem:[#allocation8 + $0x468] sm:$0xff] }
  0x90   :  { %772 = vmatpush.msrb.mxu0 %v452_v7  ;;  %792 = vmatpush.msrb.mxu1 %v516_v8  ;;  %v636_v60 = vld [vmem:[#allocation8 + $0x6c8] sm:$0xff]  ;;  %v481_v8 = vld [vmem:[#allocation8 + $0x1f0] sm:$0xff] }
  0x91   :  { %812 = vmatpush.msrb.mxu2 %v580_v46  ;;  %830 = vmatpush.msrb.mxu3 %v652_v47  ;;  %v556_v0 = vld [vmem:[#allocation8 + $0x448] sm:$0xff]  ;;  %v421_v46 = vld [vmem:[#allocation8 + $0x10] sm:$0xff] }
  0x92   :  { %773 = vmatpush.msrb.mxu0 %v448_v9  ;;  %793 = vmatpush.msrb.mxu1 %v512_v10  ;;  %v632_v1 = vld [vmem:[#allocation8 + $0x6a8] sm:$0xff]  ;;  %v497_v47 = vld [vmem:[#allocation8 + $0x270] sm:$0xff] }
  0x93   :  { %813 = vmatpush.msrb.mxu2 %v576_v48  ;;  %831 = vmatpush.msrb.mxu3 %v648_v49  ;;  %v552_v4 = vld [vmem:[#allocation8 + $0x428] sm:$0xff]  ;;  %v250_v49 = vperm.slane %v1449_v50, 3  ;;  %v474_v50 = vld [vmem:[#allocation8 + $0x1b8] sm:$0xff] }
  0x94   :  { %774 = vmatpush.msrb.mxu0 %v444_v11  ;;  %794 = vmatpush.msrb.mxu1 %v508_v16  ;;  %v628_v5 = vld [vmem:[#allocation8 + $0x688] sm:$0xff] }
  0x95   :  { %814 = vmatpush.msrb.mxu2 %v572_v51  ;;  %832 = vmatpush.msrb.mxu3 %v644_v52  ;;  %v548_v10 = vld [vmem:[#allocation8 + $0x408] sm:$0xff]  ;;  %v482_v51 = vld [vmem:[#allocation8 + $0x1f8] sm:$0xff] }
  0x96   :  { %775 = vmatpush.msrb.mxu0 %v440_v62  ;;  %795 = vmatpush.msrb.mxu1 %v504_v19  ;;  %v624_v11 = vld [vmem:[#allocation8 + $0x668] sm:$0xff]  ;;  %v477_v62 = vld [vmem:[#allocation8 + $0x1d0] sm:$0xff] }
  0x97   :  { %815 = vmatpush.msrb.mxu2 %v568_v53  ;;  %833 = vmatpush.msrb.mxu3 %v640_v55  ;;  %v465_v19 = vld [vmem:[#allocation8 + $0x170] sm:$0xff]  ;;  %v612_v21 = vld [vmem:[#allocation8 + $0x608] sm:$0xff] }
  0x98   :  { %776 = vmatpush.msrb.mxu0 %v436_v12  ;;  %796 = vmatpush.msrb.mxu1 %v500_v23  ;;  %v537_v23 = vld [vmem:[#allocation8 + $0x3b0] sm:$0xff] }
  0x99   :  { %816 = vmatpush.msrb.mxu2 %v564_v56  ;;  %834 = vmatpush.msrb.mxu3 %v636_v60  ;;  %v609_v53 = vld [vmem:[#allocation8 + $0x5f0] sm:$0xff]  ;;  %v478_v56 = vld [vmem:[#allocation8 + $0x1d8] sm:$0xff] }
  0x9a   :  { %777 = vmatpush.msrb.mxu0 %v432_v15  ;;  %797 = vmatpush.msrb.mxu1 %v496_v27  ;;  %v620_v15 = vld [vmem:[#allocation8 + $0x648] sm:$0xff]  ;;  %v529_v27 = vld [vmem:[#allocation8 + $0x370] sm:$0xff] }
  0x9b   :  { %817 = vmatpush.msrb.mxu2 %v560_v59  ;;  %835 = vmatpush.msrb.mxu3 %v632_v1  ;;  %v489_v59 = vld [vmem:[#allocation8 + $0x230] sm:$0xff] }
  0x9c   :  { %778 = vmatpush.msrb.mxu0 %v428_v18  ;;  %798 = vmatpush.msrb.mxu1 %v492_v30  ;;  %v616_v18 = vld [vmem:[#allocation8 + $0x628] sm:$0xff]  ;;  %v445_v30 = vld [vmem:[#allocation8 + $0xd0] sm:$0xff] }
  0x9d   :  { %818 = vmatpush.msrb.mxu2 %v556_v0  ;;  %836 = vmatpush.msrb.mxu3 %v628_v5  ;;  %v485_v0 = vld [vmem:[#allocation8 + $0x210] sm:$0xff]  ;;  %v470_v5 = vld [vmem:[#allocation8 + $0x198] sm:$0xff] }
  0x9e   :  { %779 = vmatpush.msrb.mxu0 %v424_v22  ;;  %799 = vmatpush.msrb.mxu1 %v488_v33  ;;  %v461_v22 = vld [vmem:[#allocation8 + $0x150] sm:$0xff] }
  0x9f   :  { %819 = vmatpush.msrb.mxu2 %v552_v4  ;;  %837 = vmatpush.msrb.mxu3 %v624_v11  ;;  %v517_v33 = vld [vmem:[#allocation8 + $0x310] sm:$0xff]  ;;  %v542_v11 = vld [vmem:[#allocation8 + $0x3d8] sm:$0xff] }
  0xa0   :  { %780 = vmatpush.msrb.mxu0 %v420_v26  ;;  %800 = vmatpush.msrb.mxu1 %v484_v36  ;;  %v453_v26 = vld [vmem:[#allocation8 + $0x110] sm:$0xff] }
  0xa1   :  { %820 = vmatpush.msrb.mxu2 %v548_v10  ;;  %838 = vmatpush.msrb.mxu3 %v620_v15  ;;  %v433_v36 = vld [vmem:[#allocation8 + $0x70] sm:$0xff]  ;;  %v466_v10 = vld [vmem:[#allocation8 + $0x178] sm:$0xff] }
  0xa2   :  { %v673_v4 = vld [vmem:[#allocation8 + $0x7f0] sm:$0xff] }
  0xa3   :  { %839 = vmatpush.msrb.mxu3 %v616_v18  ;;  %v661_v15 = vld [vmem:[#allocation8 + $0x790] sm:$0xff]  ;;  %v534_v18 = vld [vmem:[#allocation8 + $0x398] sm:$0xff] }
  0xa5   :  { %840 = vmatpush.msrb.mxu3 %v612_v21  ;;  %v454_v21 = vld [vmem:[#allocation8 + $0x118] sm:$0xff] }
  0xba   :  { %v272_v57 = vpop.f32.mrf.mxu0 }
  0xbb   :  { %v273_v58 = vadd.f32 %v272_v57, %v247_v54  ;;  %v493_v54 = vld [vmem:[#allocation8 + $0x250] sm:$0xff] }
  0xbd   :  { %v292_v61 = vpop.f32.mrf.mxu1 }
  0xbe   :  { %v293_v2 = vadd.f32 %v292_v61, %v273_v58  ;;  %v605_v58 = vld [vmem:[#allocation8 + $0x5d0] sm:$0xff] }
  0xc0   :  { %v1453_v6 = vmax.f32 %v293_v2, 0.0  ;;  %v312_v7 = vpop.f32.mrf.mxu2  ;;  %v597_v2 = vld [vmem:[#allocation8 + $0x590] sm:$0xff] }
  0xc1   :  { %v313_v9 = vadd.f32 %v312_v7, %v248_v63  ;;  %v601_v63 = vld [vmem:[#allocation8 + $0x5b0] sm:$0xff]  ;;  %v546_v7 = vld [vmem:[#allocation8 + $0x3f8] sm:$0xff] }
  0xc2   :  { %701 = vmatmul.f32.vlgmr.msra.gmra.mxu0 %v1453_v6 }
  0xc3   :  { %845 = vmatpush.msra.mxu0 %v481_v8  ;;  %v332_v12 = vpop.f32.mrf.mxu3  ;;  %v669_v8 = vld [vmem:[#allocation8 + $0x7d0] sm:$0xff] }
  0xc4   :  { %v333_v13 = vadd.f32 %v332_v12, %v313_v9  ;;  %v593_v9 = vld [vmem:[#allocation8 + $0x570] sm:$0xff] }
  0xc5   :  { %846 = vmatpush.msra.mxu0 %v477_v62  ;;  %v665_v62 = vld [vmem:[#allocation8 + $0x7b0] sm:$0xff] }
  0xc6   :  { %v1456_v16 = vmax.f32 %v333_v13, 0.0  ;;  %v589_v12 = vld [vmem:[#allocation8 + $0x550] sm:$0xff]  ;;  %v462_v13 = vld [vmem:[#allocation8 + $0x158] sm:$0xff] }
  0xc7   :  { %847 = vmatpush.msra.mxu0 %v473_v14  ;;  %v538_v14 = vld [vmem:[#allocation8 + $0x3b8] sm:$0xff] }
  0xc8   :  { %721 = vmatmul.f32.vlgmr.msra.gmra.mxu1 %v1456_v16 }
  0xc9   :  { %848 = vmatpush.msra.mxu0 %v469_v3  ;;  %865 = vmatpush.msra.mxu1 %v545_v17  ;;  %v585_v3 = vld [vmem:[#allocation8 + $0x530] sm:$0xff]  ;;  %v458_v17 = vld [vmem:[#allocation8 + $0x138] sm:$0xff] }
  0xca   :  { %781 = vmatmul.f32.vlgmr.msrb.gmra.mxu0 %v1453_v6 }
  0xcb   :  { %849 = vmatpush.msra.mxu0 %v465_v19  ;;  %866 = vmatpush.msra.mxu1 %v541_v20  ;;  %v581_v19 = vld [vmem:[#allocation8 + $0x510] sm:$0xff] }
  0xcc   :  { %v657_v20 = vld [vmem:[#allocation8 + $0x770] sm:$0xff] }
  0xcd   :  { %850 = vmatpush.msra.mxu0 %v461_v22  ;;  %867 = vmatpush.msra.mxu1 %v537_v23  ;;  %v530_v22 = vld [vmem:[#allocation8 + $0x378] sm:$0xff]  ;;  %v577_v23 = vld [vmem:[#allocation8 + $0x4f0] sm:$0xff] }
  0xcf   :  { %851 = vmatpush.msra.mxu0 %v457_v24  ;;  %868 = vmatpush.msra.mxu1 %v533_v25  ;;  %v653_v24 = vld [vmem:[#allocation8 + $0x750] sm:$0xff]  ;;  %v450_v25 = vld [vmem:[#allocation8 + $0xf8] sm:$0xff] }
  0xd0   :  { %801 = vmatmul.f32.vlgmr.msrb.gmra.mxu1 %v1456_v16 }
  0xd1   :  { %852 = vmatpush.msra.mxu0 %v453_v26  ;;  %869 = vmatpush.msra.mxu1 %v529_v27  ;;  %v526_v26 = vld [vmem:[#allocation8 + $0x358] sm:$0xff]  ;;  %v573_v27 = vld [vmem:[#allocation8 + $0x4d0] sm:$0xff] }
  0xd3   :  { %853 = vmatpush.msra.mxu0 %v449_v28  ;;  %870 = vmatpush.msra.mxu1 %v525_v29  ;;  %v649_v28 = vld [vmem:[#allocation8 + $0x730] sm:$0xff]  ;;  %v446_v29 = vld [vmem:[#allocation8 + $0xd8] sm:$0xff] }
  0xd5   :  { %854 = vmatpush.msra.mxu0 %v445_v30  ;;  %871 = vmatpush.msra.mxu1 %v521_v31  ;;  %v522_v30 = vld [vmem:[#allocation8 + $0x338] sm:$0xff]  ;;  %v569_v31 = vld [vmem:[#allocation8 + $0x4b0] sm:$0xff] }
  0xd7   :  { %855 = vmatpush.msra.mxu0 %v441_v32  ;;  %872 = vmatpush.msra.mxu1 %v517_v33  ;;  %v645_v32 = vld [vmem:[#allocation8 + $0x710] sm:$0xff]  ;;  %v442_v33 = vld [vmem:[#allocation8 + $0xb8] sm:$0xff] }
  0xd9   :  { %856 = vmatpush.msra.mxu0 %v437_v34  ;;  %873 = vmatpush.msra.mxu1 %v513_v35  ;;  %v518_v34 = vld [vmem:[#allocation8 + $0x318] sm:$0xff]  ;;  %v565_v35 = vld [vmem:[#allocation8 + $0x490] sm:$0xff] }
  0xdb   :  { %857 = vmatpush.msra.mxu0 %v433_v36  ;;  %874 = vmatpush.msra.mxu1 %v509_v37  ;;  %v641_v36 = vld [vmem:[#allocation8 + $0x6f0] sm:$0xff]  ;;  %v438_v37 = vld [vmem:[#allocation8 + $0x98] sm:$0xff] }
  0xdc   :  { %v352_v41 = vpop.f32.mrf.mxu0 }
  0xdd   :  { %v353_v44 = vadd.f32 %v352_v41, %v249_v38  ;;  %858 = vmatpush.msra.mxu0 %v429_v39  ;;  %875 = vmatpush.msra.mxu1 %v505_v40  ;;  %v514_v38 = vld [vmem:[#allocation8 + $0x2f8] sm:$0xff]  ;;  %v561_v39 = vld [vmem:[#allocation8 + $0x470] sm:$0xff] }
  0xde   :  { %v372_v45 = vpop.f32.mrf.mxu1  ;;  %v637_v40 = vld [vmem:[#allocation8 + $0x6d0] sm:$0xff]  ;;  %v434_v41 = vld [vmem:[#allocation8 + $0x78] sm:$0xff] }
  0xdf   :  { %v373_v48 = vadd.f32 %v372_v45, %v353_v44  ;;  %859 = vmatpush.msra.mxu0 %v425_v42  ;;  %876 = vmatpush.msra.mxu1 %v501_v43  ;;  %v510_v42 = vld [vmem:[#allocation8 + $0x2d8] sm:$0xff]  ;;  %v557_v43 = vld [vmem:[#allocation8 + $0x450] sm:$0xff] }
  0xe0   :  { %v633_v44 = vld [vmem:[#allocation8 + $0x6b0] sm:$0xff]  ;;  %v430_v45 = vld [vmem:[#allocation8 + $0x58] sm:$0xff] }
  0xe1   :  { %v1463_v52 = vmax.f32 %v373_v48, 0.0  ;;  %860 = vmatpush.msra.mxu0 %v421_v46  ;;  %877 = vmatpush.msra.mxu1 %v497_v47  ;;  %v506_v46 = vld [vmem:[#allocation8 + $0x2b8] sm:$0xff]  ;;  %v553_v47 = vld [vmem:[#allocation8 + $0x430] sm:$0xff] }
  0xe2   :  { %v392_v55 = vpop.f32.mrf.mxu2  ;;  %861 = vmatmul.f32.vlgmr.msra.gmra.mxu0 %v1453_v6  ;;  %v629_v48 = vld [vmem:[#allocation8 + $0x690] sm:$0xff] }
  0xe3   :  { %v393_v57 = vadd.f32 %v392_v55, %v250_v49  ;;  %741 = vmatmul.f32.vlgmr.msra.gmra.mxu2 %v1463_v52  ;;  %925 = vmatpush.msrb.mxu0 %v482_v51  ;;  %v426_v49 = vld [vmem:[#allocation8 + $0x38] sm:$0xff] }
  0xe4   :  { %885 = vmatpush.msra.mxu2 %v609_v53  ;;  %v412_v60 = vpop.f32.mrf.mxu3  ;;  %878 = vmatpush.msra.mxu1 %v493_v54  ;;  %v502_v51 = vld [vmem:[#allocation8 + $0x298] sm:$0xff]  ;;  %v549_v53 = vld [vmem:[#allocation8 + $0x410] sm:$0xff] }
  0xe5   :  { %v413_v61 = vadd.f32 %v412_v60, %v393_v57  ;;  %926 = vmatpush.msrb.mxu0 %v478_v56  ;;  %v625_v54 = vld [vmem:[#allocation8 + $0x670] sm:$0xff]  ;;  %v422_v55 = vld [vmem:[#allocation8 + $0x18] sm:$0xff] }
  0xe6   :  { %886 = vmatpush.msra.mxu2 %v605_v58  ;;  %879 = vmatpush.msra.mxu1 %v489_v59  ;;  %v498_v56 = vld [vmem:[#allocation8 + $0x278] sm:$0xff]  ;;  %v621_v58 = vld [vmem:[#allocation8 + $0x650] sm:$0xff] }
  0xe7   :  { %v1467_v1 = vmax.f32 %v413_v61, 0.0  ;;  %927 = vmatpush.msrb.mxu0 %v474_v50  ;;  %v610_v57 = vld [vmem:[#allocation8 + $0x5f8] sm:$0xff]  ;;  %v617_v50 = vld [vmem:[#allocation8 + $0x630] sm:$0xff] }
  0xe8   :  { %887 = vmatpush.msra.mxu2 %v601_v63  ;;  %880 = vmatpush.msra.mxu1 %v485_v0  ;;  %v494_v59 = vld [vmem:[#allocation8 + $0x258] sm:$0xff]  ;;  %v613_v0 = vld [vmem:[#allocation8 + $0x610] sm:$0xff] }
  0xe9   :  { %761 = vmatmul.f32.vlgmr.msra.gmra.mxu3 %v1467_v1  ;;  %881 = vmatmul.f32.vlgmr.msra.gmra.mxu1 %v1456_v16  ;;  %v606_v60 = vld [vmem:[#allocation8 + $0x5d8] sm:$0xff] }
  0xea   :  { %888 = vmatpush.msra.mxu2 %v597_v2  ;;  %905 = vmatpush.msra.mxu3 %v673_v4  ;;  %v490_v61 = vld [vmem:[#allocation8 + $0x238] sm:$0xff] }
  0xeb   :  { %928 = vmatpush.msrb.mxu0 %v470_v5  ;;  %945 = vmatpush.msrb.mxu1 %v546_v7  ;;  %v602_v63 = vld [vmem:[#allocation8 + $0x5b8] sm:$0xff] }
  0xec   :  { %821 = vmatmul.f32.vlgmr.msrb.gmra.mxu2 %v1463_v52  ;;  %906 = vmatpush.msra.mxu3 %v669_v8  ;;  %v486_v2 = vld [vmem:[#allocation8 + $0x218] sm:$0xff] }
  0xed   :  { %889 = vmatpush.msra.mxu2 %v593_v9  ;;  %929 = vmatpush.msrb.mxu0 %v466_v10  ;;  %v598_v4 = vld [vmem:[#allocation8 + $0x598] sm:$0xff] }
  0xee   :  { %946 = vmatpush.msrb.mxu1 %v542_v11  ;;  %907 = vmatpush.msra.mxu3 %v665_v62  ;;  %v674_v5 = vld [vmem:[#allocation8 + $0x7f8] sm:$0xff] }
  0xef   :  { %890 = vmatpush.msra.mxu2 %v589_v12  ;;  %930 = vmatpush.msrb.mxu0 %v462_v13  ;;  %v670_v7 = vld [vmem:[#allocation8 + $0x7d8] sm:$0xff] }
  0xf0   :  { %947 = vmatpush.msrb.mxu1 %v538_v14  ;;  %908 = vmatpush.msra.mxu3 %v661_v15  ;;  %v590_v8 = vld [vmem:[#allocation8 + $0x558] sm:$0xff] }
  0xf1   :  { %891 = vmatpush.msra.mxu2 %v585_v3  ;;  %931 = vmatpush.msrb.mxu0 %v458_v17  ;;  %v666_v9 = vld [vmem:[#allocation8 + $0x7b8] sm:$0xff] }
  0xf2   :  { %948 = vmatpush.msrb.mxu1 %v534_v18  ;;  %841 = vmatmul.f32.vlgmr.msrb.gmra.mxu3 %v1467_v1  ;;  %v586_v10 = vld [vmem:[#allocation8 + $0x538] sm:$0xff] }
  0xf3   :  { %892 = vmatpush.msra.mxu2 %v581_v19  ;;  %909 = vmatpush.msra.mxu3 %v657_v20  ;;  %v662_v11 = vld [vmem:[#allocation8 + $0x798] sm:$0xff] }
  0xf4   :  { %932 = vmatpush.msrb.mxu0 %v454_v21  ;;  %949 = vmatpush.msrb.mxu1 %v530_v22  ;;  %v582_v62 = vld [vmem:[#allocation8 + $0x518] sm:$0xff] }
  0xf5   :  { %893 = vmatpush.msra.mxu2 %v577_v23  ;;  %910 = vmatpush.msra.mxu3 %v653_v24  ;;  %v658_v12 = vld [vmem:[#allocation8 + $0x778] sm:$0xff] }
  0xf6   :  { %933 = vmatpush.msrb.mxu0 %v450_v25  ;;  %950 = vmatpush.msrb.mxu1 %v526_v26  ;;  %v578_v13 = vld [vmem:[#allocation8 + $0x4f8] sm:$0xff] }
  0xf7   :  { %894 = vmatpush.msra.mxu2 %v573_v27  ;;  %911 = vmatpush.msra.mxu3 %v649_v28  ;;  %v654_v14 = vld [vmem:[#allocation8 + $0x758] sm:$0xff] }
  0xf8   :  { %934 = vmatpush.msrb.mxu0 %v446_v29  ;;  %951 = vmatpush.msrb.mxu1 %v522_v30  ;;  %v650_v15 = vld [vmem:[#allocation8 + $0x738] sm:$0xff] }
  0xf9   :  { %895 = vmatpush.msra.mxu2 %v569_v31  ;;  %912 = vmatpush.msra.mxu3 %v645_v32  ;;  %v570_v3 = vld [vmem:[#allocation8 + $0x4b8] sm:$0xff]  ;;  %v1022_v32 = vld [vmem:[#allocation11 + $0x68] sm:$0xff] }
  0xfa   :  { %935 = vmatpush.msrb.mxu0 %v442_v33  ;;  %952 = vmatpush.msrb.mxu1 %v518_v34  ;;  %v646_v17 = vld [vmem:[#allocation8 + $0x718] sm:$0xff]  ;;  %v1021_v34 = vld [vmem:[#allocation11 + $0x60] sm:$0xff] }
  0xfb   :  { %896 = vmatpush.msra.mxu2 %v565_v35  ;;  %913 = vmatpush.msra.mxu3 %v641_v36  ;;  %v566_v18 = vld [vmem:[#allocation8 + $0x498] sm:$0xff] }
  0xfc   :  { %936 = vmatpush.msrb.mxu0 %v438_v37  ;;  %953 = vmatpush.msrb.mxu1 %v514_v38  ;;  %v642_v19 = vld [vmem:[#allocation8 + $0x6f8] sm:$0xff] }
  0xfd   :  { %897 = vmatpush.msra.mxu2 %v561_v39  ;;  %914 = vmatpush.msra.mxu3 %v637_v40  ;;  %v562_v20 = vld [vmem:[#allocation8 + $0x478] sm:$0xff]  ;;  %v1038_v39 = vld [vmem:[#allocation11 + $0xe8] sm:$0xff]  ;;  %v1017_v40 = vld [vmem:[#allocation11 + $0x40] sm:$0xff] }
  0xfe   :  { %937 = vmatpush.msrb.mxu0 %v434_v41  ;;  %954 = vmatpush.msrb.mxu1 %v510_v42  ;;  %v638_v21 = vld [vmem:[#allocation8 + $0x6d8] sm:$0xff]  ;;  %v1037_v41 = vld [vmem:[#allocation11 + $0xe0] sm:$0xff] }
  0xff   :  { %898 = vmatpush.msra.mxu2 %v557_v43  ;;  %915 = vmatpush.msra.mxu3 %v633_v44  ;;  %v558_v22 = vld [vmem:[#allocation8 + $0x458] sm:$0xff] }
 0x100   :  { %938 = vmatpush.msrb.mxu0 %v430_v45  ;;  %955 = vmatpush.msrb.mxu1 %v506_v46  ;;  %v634_v23 = vld [vmem:[#allocation8 + $0x6b8] sm:$0xff]  ;;  %v1014_v46 = vld [vmem:[#allocation11 + $0x28] sm:$0xff] }
 0x101   :  { %899 = vmatpush.msra.mxu2 %v553_v47  ;;  %916 = vmatpush.msra.mxu3 %v629_v48  ;;  %v554_v24 = vld [vmem:[#allocation8 + $0x438] sm:$0xff]  ;;  %v1013_v47 = vld [vmem:[#allocation11 + $0x20] sm:$0xff] }
 0x102   :  { %939 = vmatpush.msrb.mxu0 %v426_v49  ;;  %956 = vmatpush.msrb.mxu1 %v502_v51  ;;  %v630_v25 = vld [vmem:[#allocation8 + $0x698] sm:$0xff]  ;;  %v1033_v48 = vld [vmem:[#allocation11 + $0xc0] sm:$0xff] }
 0x103   :  { %900 = vmatpush.msra.mxu2 %v549_v53  ;;  %917 = vmatpush.msra.mxu3 %v625_v54  ;;  %v1024_v26 = vld [vmem:[#allocation11 + $0x78] sm:$0xff]  ;;  %v1023_v27 = vld [vmem:[#allocation11 + $0x70] sm:$0xff] }
 0x104   :  { %940 = vmatpush.msrb.mxu0 %v422_v55  ;;  %957 = vmatpush.msrb.mxu1 %v498_v56  ;;  %v550_v28 = vld [vmem:[#allocation8 + $0x418] sm:$0xff]  ;;  %v1010_v55 = vld [vmem:[#allocation11 + $0x8] sm:$0xff] }
 0x105   :  { %901 = vmatmul.f32.vlgmr.msra.gmra.mxu2 %v1463_v52  ;;  %941 = vmatmul.f32.vlgmr.msrb.gmra.mxu0 %v1453_v6  ;;  %v594_v6 = vld [vmem:[#allocation8 + $0x578] sm:$0xff]  ;;  %v1030_v56 = vld [vmem:[#allocation11 + $0xa8] sm:$0xff] }
 0x106   :  { %965 = vmatpush.msrb.mxu2 %v610_v57  ;;  %918 = vmatpush.msra.mxu3 %v621_v58  ;;  %v626_v29 = vld [vmem:[#allocation8 + $0x678] sm:$0xff]  ;;  %v1009_v57 = vld [vmem:[#allocation11] sm:$0xff] }
 0x107   :  { %958 = vmatpush.msrb.mxu1 %v494_v59  ;;  %1077 = vmatpush.msra.mxu0 %v1024_v26  ;;  %v622_v30 = vld [vmem:[#allocation8 + $0x658] sm:$0xff]  ;;  %v1029_v58 = vld [vmem:[#allocation11 + $0xa0] sm:$0xff] }
 0x108   :  { %966 = vmatpush.msrb.mxu2 %v606_v60  ;;  %919 = vmatpush.msra.mxu3 %v617_v50  ;;  %v618_v31 = vld [vmem:[#allocation8 + $0x638] sm:$0xff] }
 0x109   :  { %959 = vmatpush.msrb.mxu1 %v490_v61  ;;  %1078 = vmatpush.msra.mxu0 %v1023_v27  ;;  %v614_v33 = vld [vmem:[#allocation8 + $0x618] sm:$0xff] }
 0x10a   :  { %967 = vmatpush.msrb.mxu2 %v602_v63  ;;  %920 = vmatpush.msra.mxu3 %v613_v0  ;;  %v1020_v35 = vld [vmem:[#allocation11 + $0x58] sm:$0xff]  ;;  %v1039_v37 = vld [vmem:[#allocation11 + $0xf0] sm:$0xff]  ;;  %v1054_v63 = vld [vmem:[#allocation11 + $0x168] sm:$0xff] }
 0x10b   :  { %960 = vmatpush.msrb.mxu1 %v486_v2  ;;  %921 = vmatmul.f32.vlgmr.msra.gmra.mxu3 %v1467_v1  ;;  %v1040_v36 = vld [vmem:[#allocation11 + $0xf8] sm:$0xff]  ;;  %v1019_v38 = vld [vmem:[#allocation11 + $0x50] sm:$0xff]  ;;  %v1026_v0 = vld [vmem:[#allocation11 + $0x88] sm:$0xff] }
 0x10c   :  { %961 = vmatmul.f32.vlgmr.msrb.gmra.mxu1 %v1456_v16  ;;  %968 = vmatpush.msrb.mxu2 %v598_v4  ;;  %v574_v16 = vld [vmem:[#allocation8 + $0x4d8] sm:$0xff]  ;;  %v1053_v2 = vld [vmem:[#allocation11 + $0x160] sm:$0xff] }
 0x10d   :  { %985 = vmatpush.msrb.mxu3 %v674_v5  ;;  %1079 = vmatpush.msra.mxu0 %v1022_v32  ;;  %v1016_v42 = vld [vmem:[#allocation11 + $0x38] sm:$0xff]  ;;  %v1015_v44 = vld [vmem:[#allocation11 + $0x30] sm:$0xff]  ;;  %v1025_v4 = vld [vmem:[#allocation11 + $0x80] sm:$0xff] }
 0x10e   :  { %969 = vmatpush.msrb.mxu2 %v594_v6  ;;  %1097 = vmatpush.msra.mxu1 %v1040_v36  ;;  %v1036_v43 = vld [vmem:[#allocation11 + $0xd8] sm:$0xff]  ;;  %v1035_v45 = vld [vmem:[#allocation11 + $0xd0] sm:$0xff]  ;;  %v1070_v36 = vld [vmem:[#allocation11 + $0x1e8] sm:$0xff] }
 0x10f   :  { %986 = vmatpush.msrb.mxu3 %v670_v7  ;;  %1080 = vmatpush.msra.mxu0 %v1021_v34  ;;  %v1012_v49 = vld [vmem:[#allocation11 + $0x18] sm:$0xff]  ;;  %v1011_v53 = vld [vmem:[#allocation11 + $0x10] sm:$0xff] }
 0x110   :  { %970 = vmatpush.msrb.mxu2 %v590_v8  ;;  %1098 = vmatpush.msra.mxu1 %v1039_v37  ;;  %v1032_v51 = vld [vmem:[#allocation11 + $0xb8] sm:$0xff]  ;;  %v1031_v54 = vld [vmem:[#allocation11 + $0xb0] sm:$0xff]  ;;  %v1050_v8 = vld [vmem:[#allocation11 + $0x148] sm:$0xff] }
 0x111   :  { %987 = vmatpush.msrb.mxu3 %v666_v9  ;;  %1081 = vmatpush.msra.mxu0 %v1020_v35  ;;  %v1056_v59 = vld [vmem:[#allocation11 + $0x178] sm:$0xff]  ;;  %v1055_v60 = vld [vmem:[#allocation11 + $0x170] sm:$0xff] }
 0x112   :  { %971 = vmatpush.msrb.mxu2 %v586_v10  ;;  %1099 = vmatpush.msra.mxu1 %v1038_v39  ;;  %v1028_v50 = vld [vmem:[#allocation11 + $0x98] sm:$0xff]  ;;  %v1027_v61 = vld [vmem:[#allocation11 + $0x90] sm:$0xff] }
 0x113   :  { %988 = vmatpush.msrb.mxu3 %v662_v11  ;;  %1082 = vmatpush.msra.mxu0 %v1019_v38  ;;  %v1052_v5 = vld [vmem:[#allocation11 + $0x158] sm:$0xff]  ;;  %v1051_v6 = vld [vmem:[#allocation11 + $0x150] sm:$0xff]  ;;  %v1049_v11 = vld [vmem:[#allocation11 + $0x140] sm:$0xff] }
 0x114   :  { %972 = vmatpush.msrb.mxu2 %v582_v62  ;;  %1100 = vmatpush.msra.mxu1 %v1037_v41  ;;  %v1479_v7 = vld [vmem:[#allocation10] sm:$0xf]  ;;  %v1043_v27 = vld [vmem:[#allocation11 + $0x110] sm:$0xff]  ;;  %v1069_v38 = vld [vmem:[#allocation11 + $0x1e0] sm:$0xff] }
 0x115   :  { %989 = vmatpush.msrb.mxu3 %v658_v12  ;;  %v677_v9 = vperm.slane %v1479_v7, 0  ;;  %v1048_v62 = vld [vmem:[#allocation11 + $0x138] sm:$0xff]  ;;  %v1066_v41 = vld [vmem:[#allocation11 + $0x1c8] sm:$0xff] }
 0x116   :  { %973 = vmatpush.msrb.mxu2 %v578_v13  ;;  %1101 = vmatpush.msra.mxu1 %v1036_v43  ;;  %v1072_v32 = vld [vmem:[#allocation11 + $0x1f8] sm:$0xff] }
 0x117   :  { %990 = vmatpush.msrb.mxu3 %v654_v14  ;;  %v1047_v14 = vld [vmem:[#allocation11 + $0x130] sm:$0xff]  ;;  %v1068_v39 = vld [vmem:[#allocation11 + $0x1d8] sm:$0xff] }
 0x118   :  { %974 = vmatpush.msrb.mxu2 %v574_v16  ;;  %1102 = vmatpush.msra.mxu1 %v1035_v45  ;;  %v1064_v43 = vld [vmem:[#allocation11 + $0x1b8] sm:$0xff]  ;;  %v679_v45 = vperm.slane %v1479_v7, 2 }
 0x119   :  { %991 = vmatpush.msrb.mxu3 %v650_v15 }
 0x11a   :  { %975 = vmatpush.msrb.mxu2 %v570_v3  ;;  %v1046_v3 = vld [vmem:[#allocation11 + $0x128] sm:$0xff] }
 0x11b   :  { %992 = vmatpush.msrb.mxu3 %v646_v17  ;;  %v678_v17 = vperm.slane %v1479_v7, 1 }
 0x11c   :  { %976 = vmatpush.msrb.mxu2 %v566_v18  ;;  %v1045_v18 = vld [vmem:[#allocation11 + $0x120] sm:$0xff] }
 0x11d   :  { %993 = vmatpush.msrb.mxu3 %v642_v19 }
 0x11e   :  { %977 = vmatpush.msrb.mxu2 %v562_v20  ;;  %v1044_v20 = vld [vmem:[#allocation11 + $0x118] sm:$0xff] }
 0x11f   :  { %994 = vmatpush.msrb.mxu3 %v638_v21 }
 0x120   :  { %978 = vmatpush.msrb.mxu2 %v558_v22 }
 0x121   :  { %995 = vmatpush.msrb.mxu3 %v634_v23 }
 0x122   :  { %979 = vmatpush.msrb.mxu2 %v554_v24 }
 0x123   :  { %996 = vmatpush.msrb.mxu3 %v630_v25 }
 0x124   :  { %980 = vmatpush.msrb.mxu2 %v550_v28 }
 0x125   :  { %997 = vmatpush.msrb.mxu3 %v626_v29  ;;  %981 = vmatmul.f32.vlgmr.msrb.gmra.mxu2 %v1463_v52  ;;  %v1018_v52 = vld [vmem:[#allocation11 + $0x48] sm:$0xff] }
 0x126   :  { %1083 = vmatpush.msra.mxu0 %v1018_v52  ;;  %1117 = vmatpush.msra.mxu2 %v1056_v59  ;;  %v1042_v29 = vld [vmem:[#allocation11 + $0x108] sm:$0xff] }
 0x127   :  { %998 = vmatpush.msrb.mxu3 %v622_v30  ;;  %v1041_v30 = vld [vmem:[#allocation11 + $0x100] sm:$0xff]  ;;  %v1058_v59 = vld [vmem:[#allocation11 + $0x188] sm:$0xff] }
 0x128   :  { %1084 = vmatpush.msra.mxu0 %v1017_v40  ;;  %1118 = vmatpush.msra.mxu2 %v1055_v60  ;;  %v1067_v40 = vld [vmem:[#allocation11 + $0x1d0] sm:$0xff] }
 0x129   :  { %999 = vmatpush.msrb.mxu3 %v618_v31 }
 0x12a   :  { %1085 = vmatpush.msra.mxu0 %v1016_v42  ;;  %1119 = vmatpush.msra.mxu2 %v1054_v63  ;;  %v1065_v42 = vld [vmem:[#allocation11 + $0x1c0] sm:$0xff] }
 0x12b   :  { %1000 = vmatpush.msrb.mxu3 %v614_v33  ;;  %v1071_v33 = vld [vmem:[#allocation11 + $0x1f0] sm:$0xff] }
 0x12c   :  { %1001 = vmatmul.f32.vlgmr.msrb.gmra.mxu3 %v1467_v1  ;;  %1086 = vmatpush.msra.mxu0 %v1015_v44  ;;  %v1034_v1 = vld [vmem:[#allocation11 + $0xc8] sm:$0xff]  ;;  %v1063_v44 = vld [vmem:[#allocation11 + $0x1b0] sm:$0xff] }
 0x12d   :  { %1103 = vmatpush.msra.mxu1 %v1034_v1  ;;  %1120 = vmatpush.msra.mxu2 %v1053_v2 }
 0x12e   :  { %1087 = vmatpush.msra.mxu0 %v1014_v46  ;;  %1137 = vmatpush.msra.mxu3 %v1072_v32 }
 0x12f   :  { %1104 = vmatpush.msra.mxu1 %v1033_v48  ;;  %1121 = vmatpush.msra.mxu2 %v1052_v5 }
 0x130   :  { %1088 = vmatpush.msra.mxu0 %v1013_v47  ;;  %1138 = vmatpush.msra.mxu3 %v1071_v33  ;;  %v1062_v47 = vld [vmem:[#allocation11 + $0x1a8] sm:$0xff] }
 0x131   :  { %1105 = vmatpush.msra.mxu1 %v1032_v51  ;;  %1122 = vmatpush.msra.mxu2 %v1051_v6 }
 0x132   :  { %1089 = vmatpush.msra.mxu0 %v1012_v49  ;;  %1139 = vmatpush.msra.mxu3 %v1070_v36  ;;  %v1061_v49 = vld [vmem:[#allocation11 + $0x1a0] sm:$0xff] }
 0x133   :  { %1106 = vmatpush.msra.mxu1 %v1031_v54  ;;  %1123 = vmatpush.msra.mxu2 %v1050_v8 }
 0x134   :  { %1090 = vmatpush.msra.mxu0 %v1011_v53  ;;  %1140 = vmatpush.msra.mxu3 %v1069_v38  ;;  %v1060_v53 = vld [vmem:[#allocation11 + $0x198] sm:$0xff] }
 0x135   :  { %1107 = vmatpush.msra.mxu1 %v1030_v56  ;;  %1124 = vmatpush.msra.mxu2 %v1049_v11  ;;  %v1189_v11 = vld [vmem:[%s1497_s6] ss:$0 sm:$0xff] }
 0x136   :  { %1091 = vmatpush.msra.mxu0 %v1010_v55  ;;  %1141 = vmatpush.msra.mxu3 %v1068_v39 }
 0x137   :  { %1108 = vmatpush.msra.mxu1 %v1029_v58  ;;  %1125 = vmatpush.msra.mxu2 %v1048_v62 }
 0x138   :  { %1092 = vmatpush.msra.mxu0 %v1009_v57  ;;  %1142 = vmatpush.msra.mxu3 %v1067_v40  ;;  %v1059_v57 = vld [vmem:[#allocation11 + $0x190] sm:$0xff] }
 0x139   :  { %1109 = vmatpush.msra.mxu1 %v1028_v50  ;;  %1126 = vmatpush.msra.mxu2 %v1047_v14  ;;  %v1057_v50 = vld [vmem:[#allocation11 + $0x180] sm:$0xff] }
 0x13a   :  { %1143 = vmatpush.msra.mxu3 %v1066_v41 }
 0x13b   :  { %1110 = vmatpush.msra.mxu1 %v1027_v61  ;;  %1127 = vmatpush.msra.mxu2 %v1046_v3  ;;  %v680_v61 = vperm.slane %v1479_v7, 3 }
 0x13c   :  { %1144 = vmatpush.msra.mxu3 %v1065_v42 }
 0x13d   :  { %1111 = vmatpush.msra.mxu1 %v1026_v0  ;;  %1128 = vmatpush.msra.mxu2 %v1045_v18 }
 0x13e   :  { %1145 = vmatpush.msra.mxu3 %v1064_v43 }
 0x13f   :  { %1112 = vmatpush.msra.mxu1 %v1025_v4  ;;  %v702_v10 = vpop.f32.mrf.mxu0  ;;  %1129 = vmatpush.msra.mxu2 %v1044_v20 }
 0x140   :  { %v703_v12 = vadd.f32 %v702_v10, %v677_v9  ;;  %1146 = vmatpush.msra.mxu3 %v1063_v44 }
 0x141   :  { %1130 = vmatpush.msra.mxu2 %v1043_v27 }
 0x142   :  { %1147 = vmatpush.msra.mxu3 %v1062_v47 }
 0x143   :  { %1131 = vmatpush.msra.mxu2 %v1042_v29 }
 0x144   :  { %1148 = vmatpush.msra.mxu3 %v1061_v49 }
 0x145   :  { %v722_v13 = vpop.f32.mrf.mxu1  ;;  %1132 = vmatpush.msra.mxu2 %v1041_v30 }
 0x146   :  { %v723_v15 = vadd.f32 %v722_v13, %v703_v12  ;;  %1149 = vmatpush.msra.mxu3 %v1060_v53 }
 0x147   :  { %v782_v22 = vpop.f32.mrf.mxu0 }
 0x148   :  { %v783_v24 = vadd.f32 %v782_v22, %v678_v17  ;;  %1150 = vmatpush.msra.mxu3 %v1059_v57 }
 0x14a   :  { %1151 = vmatpush.msra.mxu3 %v1058_v59 }
 0x14c   :  { %1152 = vmatpush.msra.mxu3 %v1057_v50 }
 0x14d   :  { %v802_v25 = vpop.f32.mrf.mxu1 }
 0x14e   :  { %v803_v31 = vadd.f32 %v802_v25, %v783_v24 }
 0x15f   :  { %v862_v46 = vpop.f32.mrf.mxu0 }
 0x160   :  { %v863_v48 = vadd.f32 %v862_v46, %v679_v45 }
 0x166   :  { %v742_v16 = vpop.f32.mrf.mxu2  ;;  %v882_v1 = vpop.f32.mrf.mxu1 }
 0x167   :  { %v743_v19 = vadd.f32 %v742_v16, %v723_v15  ;;  %v883_v54 = vadd.f32 %v882_v1, %v863_v48 }
 0x16c   :  { %v762_v21 = vpop.f32.mrf.mxu3 }
 0x16d   :  { %v763_v23 = vadd.f32 %v762_v21, %v743_v19 }
 0x16f   :  { %v1005_v26 = vmax.f32 %v763_v23, 0.0  ;;  %v822_v28 = vpop.f32.mrf.mxu2 }
 0x170   :  { %v823_v34 = vadd.f32 %v822_v28, %v803_v31 }
 0x171   :  { %1093 = vmatmul.f32.vlgmr.msra.gmra.mxu0 %v1005_v26 }
 0x175   :  { %v842_v35 = vpop.f32.mrf.mxu3 }
 0x176   :  { %v843_v37 = vadd.f32 %v842_v35, %v823_v34 }
 0x178   :  { %v1006_v52 = vmax.f32 %v843_v37, 0.0 }
 0x17a   :  { %1113 = vmatmul.f32.vlgmr.msra.gmra.mxu1 %v1006_v52 }
 0x182   :  { %v942_v63 = vpop.f32.mrf.mxu0 }
 0x183   :  { %v943_v2 = vadd.f32 %v942_v63, %v680_v61 }
 0x188   :  { %v902_v51 = vpop.f32.mrf.mxu2 }
 0x189   :  { %v903_v55 = vadd.f32 %v902_v51, %v883_v54  ;;  %v962_v0 = vpop.f32.mrf.mxu1 }
 0x18a   :  { %v963_v5 = vadd.f32 %v962_v0, %v943_v2 }
 0x18e   :  { %v922_v56 = vpop.f32.mrf.mxu3 }
 0x18f   :  { %v923_v58 = vadd.f32 %v922_v56, %v903_v55 }
 0x191   :  { %v1007_v60 = vmax.f32 %v923_v58, 0.0 }
 0x193   :  { %1133 = vmatmul.f32.vlgmr.msra.gmra.mxu2 %v1007_v60 }
 0x1a8   :  { %v982_v4 = vpop.f32.mrf.mxu2 }
 0x1a9   :  { %v983_v6 = vadd.f32 %v982_v4, %v963_v5 }
 0x1af   :  { %v1002_v8 = vpop.f32.mrf.mxu3 }
 0x1b0   :  { %v1003_v9 = vadd.f32 %v1002_v8, %v983_v6 }
 0x1b2   :  { %v1008_v10 = vmax.f32 %v1003_v9, 0.0 }
 0x1b4   :  { %1153 = vmatmul.f32.vlgmr.msra.gmra.mxu3 %v1008_v10 }
 0x1ee   :  { %v1094_v62 = vpop.f32.mrf.mxu0 }
 0x1ef   :  { %v1095_v13 = vadd.f32 %v1189_v11, %v1094_v62 }
 0x1f7   :  { %v1114_v12 = vpop.f32.mrf.mxu1 }
 0x1f8   :  { %v1115_v16 = vadd.f32 %v1114_v12, %v1095_v13 }
 0x216   :  { %v1134_v14 = vpop.f32.mrf.mxu2 }
 0x217   :  { %v1135_v7 = vadd.f32 %v1134_v14, %v1115_v16 }
 0x237   :  { %v1154_v15 = vpop.f32.mrf.mxu3 }
 0x238   :  { %v1155_v3 = vadd.f32 %v1154_v15, %v1135_v7 }
 0x23a   :  { %1157 = vst [vmem:[#allocation13] sm:$0xff] %v1155_v3 }
 0x23b   :  { %1168 = dma.vmem_to_hbm [thread:$0]  %s1164_s9, 128, %s1166_s12, [#allocation4]  }
 0x23c   :  { %1366 = dma.done.wait [#allocation4], 128  }
 0x23d   :  { %1367 = vsyncadd [#allocation4], 4294967168 }
 0x23e   :  { %1173 = vsyncpa [#allocation3], 1 }
 0x23f   :  { %1174 = vsyncpa [#allocation6], 1 }
 0x240   :  { %1175 = vsyncpa [#allocation9], 1 }
 0x241   :  { %1176 = vsyncpa [#allocation12], 1 }
 0x242   :  { %1177 = vsyncpa [#allocation4], 1 }

</bundles_post_ra>
